<compile_context>
chip_gen: v7x
topology: tpu7x:2x2x1
jax: 0.10.0
libtpu: 0.0.40
codegen_flags: <defaults>
</compile_context>

<pallas_src>
import functools

import jax
import jax.numpy as jnp
from jax import lax
import numpy as np
from jax.experimental import pallas as pl
from jax.experimental.pallas import tpu as pltpu


def lstm_head_kernel(x_ref, wih_t_ref, whh_t_ref, b_ref,
                     wout_t_ref, bout_ref, out_ref, xg_ref, *, o_valid):
    """Whole forward pass (LSTM recurrence + linear + relu + log_softmax).

    x_ref      : (T, Bp, D_in)    VMEM  (batch padded to a multiple of 8)
    wih_t_ref  : (D_in, 4*Hp)     VMEM  (weight_ih_l0.T, each gate padded to Hp)
    whh_t_ref  : (Hp, 4*Hp)       VMEM  (weight_hh_l0.T, padded rows/cols zero)
    b_ref      : (1, 4*Hp)        VMEM  (bias_ih + bias_hh, per-gate padded)
    wout_t_ref : (Hp, Op)         VMEM  (output_layer.weight.T, zero padded)
    bout_ref   : (1, Op)          VMEM
    out_ref    : (Bp, Op)         VMEM
    xg_ref     : (T, Bp, 4*Hp)    VMEM scratch (precomputed input projection)
    """
    T, Bp, D = x_ref.shape
    Hp = whh_t_ref.shape[0]          # padded per-gate width (128)
    G = 4 * Hp

    # ---- Hoisted input projection: one well-shaped MXU matmul + bias, once --
    x2 = x_ref[...].reshape(T * Bp, D)
    xg = (jnp.dot(x2, wih_t_ref[...], preferred_element_type=jnp.float32)
          + b_ref[...])                                   # (T*Bp, 4*Hp)
    xg_ref[...] = xg.reshape(T, Bp, G)

    whh_t = whh_t_ref[...]                                # loop-invariant

    def step(t, carry):
        h, c = carry
        # Per-step work: small recurrent matmul + lane-aligned gate math only.
        gates = xg_ref[t] + jnp.dot(h, whh_t,
                                    preferred_element_type=jnp.float32)
        # Each gate occupies a full 128-lane block -> no cross-lane shuffles.
        i = jax.nn.sigmoid(gates[:, 0 * Hp:1 * Hp])
        f = jax.nn.sigmoid(gates[:, 1 * Hp:2 * Hp])
        g = jnp.tanh(gates[:, 2 * Hp:3 * Hp])
        o = jax.nn.sigmoid(gates[:, 3 * Hp:4 * Hp])
        c_new = f * c + i * g
        h_new = o * jnp.tanh(c_new)
        return (h_new, c_new)

    h0 = jnp.zeros((Bp, Hp), jnp.float32)
    c0 = jnp.zeros((Bp, Hp), jnp.float32)
    # T is small and the body is tiny after the hoist -> unrolling is fine.
    h_T, _ = lax.fori_loop(0, T, step, (h0, c0), unroll=True)

    # ---- Linear -> ReLU -> log_softmax(dim=1) over the real O lanes only ----
    logits = (jnp.dot(h_T, wout_t_ref[...],
                      preferred_element_type=jnp.float32)
              + bout_ref[...])                            # (Bp, Op)
    logits = jnp.maximum(logits, 0.0)
    Op = out_ref.shape[1]
    lane = lax.broadcasted_iota(jnp.int32, (Bp, Op), 1)
    logits = jnp.where(lane < o_valid, logits, -1e30)     # mask padded lanes
    m = jnp.max(logits, axis=-1, keepdims=True)
    e = jnp.exp(logits - m)
    lse = jnp.log(jnp.sum(e, axis=-1, keepdims=True)) + m
    out_ref[...] = (logits - lse).astype(out_ref.dtype)


def lstm_forward_pallas(x, params):
    """x: (T, B, D_in) f32.  Returns (B, output_dim) f32."""
    w_ih, w_hh, b_ih, b_hh, w_out, b_out = params
    T, B, D = x.shape
    H = w_ih.shape[0] // 4
    O = w_out.shape[0]

    LANE, SUB = 128, 8
    Hp = max(LANE, ((H + LANE - 1) // LANE) * LANE)   # per-gate padded width
    Op = max(LANE, ((O + LANE - 1) // LANE) * LANE)   # padded output lanes
    Bp = max(SUB, ((B + SUB - 1) // SUB) * SUB)       # padded batch sublanes

    def pad_gate_cols(w_t):
        # (rows, 4H) -> (rows, 4*Hp), each gate block right-padded with zeros.
        blocks = [jnp.pad(w_t[:, k * H:(k + 1) * H], ((0, 0), (0, Hp - H)))
                  for k in range(4)]
        return jnp.concatenate(blocks, axis=1)

    wih_t = pad_gate_cols(w_ih.T)                                   # (D, 4Hp)
    whh_t = jnp.pad(pad_gate_cols(w_hh.T), ((0, Hp - H), (0, 0)))   # (Hp, 4Hp)
    b = pad_gate_cols((b_ih + b_hh).reshape(1, 4 * H))              # (1, 4Hp)
    wout_t = jnp.pad(w_out.T, ((0, Hp - H), (0, Op - O)))           # (Hp, Op)
    bout = jnp.pad(b_out.reshape(1, O), ((0, 0), (0, Op - O)))      # (1, Op)
    x_p = jnp.pad(x, ((0, 0), (0, Bp - B), (0, 0)))                 # (T, Bp, D)

    vmem = pl.BlockSpec(memory_space=pltpu.MemorySpace.VMEM)
    out_p = pl.pallas_call(
        functools.partial(lstm_head_kernel, o_valid=O),
        out_shape=jax.ShapeDtypeStruct((Bp, Op), jnp.float32),
        in_specs=[vmem] * 6,
        out_specs=vmem,
        scratch_shapes=[pltpu.VMEM((T, Bp, 4 * Hp), jnp.float32)],
    )(x_p, wih_t, whh_t, b, wout_t, bout)
    return out_p[:B, :O]


def lstm_forward_ref(x, params):
    """Pure-JAX reference replicating the PyTorch forward exactly."""
    w_ih, w_hh, b_ih, b_hh, w_out, b_out = params
    T, B, D = x.shape
    H = w_hh.shape[1]

    def step(carry, x_t):
        h, c = carry
        gates = x_t @ w_ih.T + b_ih + h @ w_hh.T + b_hh
        i, f, g, o = jnp.split(gates, 4, axis=-1)
        i, f, o = jax.nn.sigmoid(i), jax.nn.sigmoid(f), jax.nn.sigmoid(o)
        g = jnp.tanh(g)
        c = f * c + i * g
        h = o * jnp.tanh(c)
        return (h, c), None

    (h_T, _), _ = lax.scan(step, (jnp.zeros((B, H)), jnp.zeros((B, H))), x)
    logits = jax.nn.relu(h_T @ w_out.T + b_out)
    return jax.nn.log_softmax(logits, axis=1)


def init_params(key, input_dim, hidden_dim, output_dim):
    """Deterministic init matching PyTorch shapes (num_layer=1, unidirectional)."""
    ks = jax.random.split(key, 6)
    s_lstm = 1.0 / np.sqrt(hidden_dim)
    s_lin = 1.0 / np.sqrt(hidden_dim)
    w_ih = jax.random.uniform(ks[0], (4 * hidden_dim, input_dim), jnp.float32,
                              -s_lstm, s_lstm)
    w_hh = jax.random.uniform(ks[1], (4 * hidden_dim, hidden_dim), jnp.float32,
                              -s_lstm, s_lstm)
    b_ih = jax.random.uniform(ks[2], (4 * hidden_dim,), jnp.float32, -s_lstm, s_lstm)
    b_hh = jax.random.uniform(ks[3], (4 * hidden_dim,), jnp.float32, -s_lstm, s_lstm)
    w_out = jax.random.uniform(ks[4], (output_dim, hidden_dim), jnp.float32,
                               -s_lin, s_lin)
    b_out = jax.random.uniform(ks[5], (output_dim,), jnp.float32, -s_lin, s_lin)
    return (w_ih, w_hh, b_ih, b_hh, w_out, b_out)


if __name__ == "__main__":
    # Small shapes consistent with the module: seq=8, batch=2, input=16,
    # hidden=32, output=8 (num_layer=1, bidirectional=False — the defaults).
    T, B, D_IN, H, O = 8, 2, 16, 32, 8

    key = jax.random.PRNGKey(0)
    k_x, k_p = jax.random.split(key)
    x = jax.random.normal(k_x, (T, B, D_IN), jnp.float32)
    params = init_params(k_p, D_IN, H, O)

    out = lstm_forward_pallas(x, params)
    out = jax.block_until_ready(out)

    ref = jax.block_until_ready(lstm_forward_ref(x, params))
    np.testing.assert_allclose(np.asarray(out), np.asarray(ref),
                               rtol=1e-5, atol=1e-5)

    print("KERNEL_OK")
</pallas_src>

<mosaic_0001>
module attributes {stable_mosaic.version = 11 : i64} {
  func.func @lstm_head_kernel(%arg0: memref<8x8x16xf32, #tpu.memory_space<vmem>>, %arg1: memref<16x512xf32, #tpu.memory_space<vmem>>, %arg2: memref<128x512xf32, #tpu.memory_space<vmem>>, %arg3: memref<1x512xf32, #tpu.memory_space<vmem>>, %arg4: memref<128x128xf32, #tpu.memory_space<vmem>>, %arg5: memref<1x128xf32, #tpu.memory_space<vmem>>, %arg6: memref<8x128xf32, #tpu.memory_space<vmem>>, %arg7: memref<8x8x512xf32, #tpu.memory_space<vmem>>) attributes {dimension_semantics = [], scalar_prefetch = 0 : i64, scratch_operands = 1 : i64, tpu.core_type = #tpu.core_type<tc>} {
    %c0 = arith.constant 0 : index
    %c0_0 = arith.constant 0 : index
    %c0_1 = arith.constant 0 : index
    %0 = vector.load %arg0[%c0, %c0_0, %c0_1] : memref<8x8x16xf32, #tpu.memory_space<vmem>>, vector<8x8x16xf32>
    %1 = vector.shape_cast %0 : vector<8x8x16xf32> to vector<64x16xf32>
    %c0_2 = arith.constant 0 : index
    %c0_3 = arith.constant 0 : index
    %2 = vector.load %arg1[%c0_2, %c0_3] : memref<16x512xf32, #tpu.memory_space<vmem>>, vector<16x512xf32>
    %cst = arith.constant dense<0.000000e+00> : vector<64x512xf32>
    %3 = tpu.matmul %1, %2, %cst {dimension_numbers = #tpu.dot_dimension_numbers<[1], [0], [0], [1], [0, 0, 1, 1], [], []>} : vector<64x16xf32>, vector<16x512xf32>, vector<64x512xf32> -> vector<64x512xf32>
    %c0_4 = arith.constant 0 : index
    %c0_5 = arith.constant 0 : index
    %4 = vector.load %arg3[%c0_4, %c0_5] : memref<1x512xf32, #tpu.memory_space<vmem>>, vector<1x512xf32>
    %5 = vector.broadcast %4 : vector<1x512xf32> to vector<64x512xf32>
    %6 = arith.addf %3, %5 : vector<64x512xf32>
    %7 = vector.shape_cast %6 : vector<64x512xf32> to vector<8x8x512xf32>
    %c0_6 = arith.constant 0 : index
    %c0_7 = arith.constant 0 : index
    %c0_8 = arith.constant 0 : index
    %8 = vector.load %arg7[%c0_6, %c0_7, %c0_8] : memref<8x8x512xf32, #tpu.memory_space<vmem>>, vector<8x8x512xf32>
    tpu.vector_store %arg7[%c0_6, %c0_7, %c0_8], %7 {strides = array<i32>} : memref<8x8x512xf32, #tpu.memory_space<vmem>>, vector<8x8x512xf32>,
    %c0_9 = arith.constant 0 : index
    %c0_10 = arith.constant 0 : index
    %9 = vector.load %arg2[%c0_9, %c0_10] : memref<128x512xf32, #tpu.memory_space<vmem>>, vector<128x512xf32>
    %cst_11 = arith.constant 0.000000e+00 : f32
    %10 = vector.broadcast %cst_11 : f32 to vector<8x128xf32>
    %cst_12 = arith.constant 0.000000e+00 : f32
    %11 = vector.broadcast %cst_12 : f32 to vector<8x128xf32>
    %c0_i32 = arith.constant 0 : i32
    %12 = arith.index_cast %c0_i32 : i32 to index
    %c0_13 = arith.constant 0 : index
    %c0_14 = arith.constant 0 : index
    %13 = vector.load %arg7[%12, %c0_13, %c0_14] : memref<8x8x512xf32, #tpu.memory_space<vmem>>, vector<1x8x512xf32>
    %14 = vector.shape_cast %13 : vector<1x8x512xf32> to vector<8x512xf32>
    %cst_15 = arith.constant dense<0.000000e+00> : vector<8x512xf32>
    %15 = tpu.matmul %10, %9, %cst_15 {dimension_numbers = #tpu.dot_dimension_numbers<[1], [0], [0], [1], [0, 0, 1, 1], [], []>} : vector<8x128xf32>, vector<128x512xf32>, vector<8x512xf32> -> vector<8x512xf32>
    %16 = arith.addf %14, %15 : vector<8x512xf32>
    %17 = vector.extract_strided_slice %16 {offsets = [0, 0], sizes = [8, 128], strides = [1, 1]} : vector<8x512xf32> to vector<8x128xf32>
    %18 = arith.negf %17 : vector<8x128xf32>
    %19 = math.exp %18 : vector<8x128xf32>
    %cst_16 = arith.constant 1.000000e+00 : f32
    %20 = vector.broadcast %cst_16 : f32 to vector<8x128xf32>
    %21 = arith.addf %20, %19 : vector<8x128xf32>
    %22 = arith.divf %20, %21 : vector<8x128xf32>
    %23 = vector.extract_strided_slice %16 {offsets = [0, 128], sizes = [8, 128], strides = [1, 1]} : vector<8x512xf32> to vector<8x128xf32>
    %24 = arith.negf %23 : vector<8x128xf32>
    %25 = math.exp %24 : vector<8x128xf32>
    %cst_17 = arith.constant 1.000000e+00 : f32
    %26 = vector.broadcast %cst_17 : f32 to vector<8x128xf32>
    %27 = arith.addf %26, %25 : vector<8x128xf32>
    %28 = arith.divf %26, %27 : vector<8x128xf32>
    %29 = vector.extract_strided_slice %16 {offsets = [0, 256], sizes = [8, 128], strides = [1, 1]} : vector<8x512xf32> to vector<8x128xf32>
    %30 = math.tanh %29 : vector<8x128xf32>
    %31 = vector.extract_strided_slice %16 {offsets = [0, 384], sizes = [8, 128], strides = [1, 1]} : vector<8x512xf32> to vector<8x128xf32>
    %32 = arith.negf %31 : vector<8x128xf32>
    %33 = math.exp %32 : vector<8x128xf32>
    %cst_18 = arith.constant 1.000000e+00 : f32
    %34 = vector.broadcast %cst_18 : f32 to vector<8x128xf32>
    %35 = arith.addf %34, %33 : vector<8x128xf32>
    %36 = arith.divf %34, %35 : vector<8x128xf32>
    %37 = arith.mulf %28, %11 : vector<8x128xf32>
    %38 = arith.mulf %22, %30 : vector<8x128xf32>
    %39 = arith.addf %37, %38 : vector<8x128xf32>
    %40 = math.tanh %39 : vector<8x128xf32>
    %41 = arith.mulf %36, %40 : vector<8x128xf32>
    %c1_i32 = arith.constant 1 : i32
    %42 = arith.index_cast %c1_i32 : i32 to index
    %c0_19 = arith.constant 0 : index
    %c0_20 = arith.constant 0 : index
    %43 = vector.load %arg7[%42, %c0_19, %c0_20] : memref<8x8x512xf32, #tpu.memory_space<vmem>>, vector<1x8x512xf32>
    %44 = vector.shape_cast %43 : vector<1x8x512xf32> to vector<8x512xf32>
    %cst_21 = arith.constant dense<0.000000e+00> : vector<8x512xf32>
    %45 = tpu.matmul %41, %9, %cst_21 {dimension_numbers = #tpu.dot_dimension_numbers<[1], [0], [0], [1], [0, 0, 1, 1], [], []>} : vector<8x128xf32>, vector<128x512xf32>, vector<8x512xf32> -> vector<8x512xf32>
    %46 = arith.addf %44, %45 : vector<8x512xf32>
    %47 = vector.extract_strided_slice %46 {offsets = [0, 0], sizes = [8, 128], strides = [1, 1]} : vector<8x512xf32> to vector<8x128xf32>
    %48 = arith.negf %47 : vector<8x128xf32>
    %49 = math.exp %48 : vector<8x128xf32>
    %cst_22 = arith.constant 1.000000e+00 : f32
    %50 = vector.broadcast %cst_22 : f32 to vector<8x128xf32>
    %51 = arith.addf %50, %49 : vector<8x128xf32>
    %52 = arith.divf %50, %51 : vector<8x128xf32>
    %53 = vector.extract_strided_slice %46 {offsets = [0, 128], sizes = [8, 128], strides = [1, 1]} : vector<8x512xf32> to vector<8x128xf32>
    %54 = arith.negf %53 : vector<8x128xf32>
    %55 = math.exp %54 : vector<8x128xf32>
    %cst_23 = arith.constant 1.000000e+00 : f32
    %56 = vector.broadcast %cst_23 : f32 to vector<8x128xf32>
    %57 = arith.addf %56, %55 : vector<8x128xf32>
    %58 = arith.divf %56, %57 : vector<8x128xf32>
    %59 = vector.extract_strided_slice %46 {offsets = [0, 256], sizes = [8, 128], strides = [1, 1]} : vector<8x512xf32> to vector<8x128xf32>
    %60 = math.tanh %59 : vector<8x128xf32>
    %61 = vector.extract_strided_slice %46 {offsets = [0, 384], sizes = [8, 128], strides = [1, 1]} : vector<8x512xf32> to vector<8x128xf32>
    %62 = arith.negf %61 : vector<8x128xf32>
    %63 = math.exp %62 : vector<8x128xf32>
    %cst_24 = arith.constant 1.000000e+00 : f32
    %64 = vector.broadcast %cst_24 : f32 to vector<8x128xf32>
    %65 = arith.addf %64, %63 : vector<8x128xf32>
    %66 = arith.divf %64, %65 : vector<8x128xf32>
    %67 = arith.mulf %58, %39 : vector<8x128xf32>
    %68 = arith.mulf %52, %60 : vector<8x128xf32>
    %69 = arith.addf %67, %68 : vector<8x128xf32>
    %70 = math.tanh %69 : vector<8x128xf32>
    %71 = arith.mulf %66, %70 : vector<8x128xf32>
    %c2_i32 = arith.constant 2 : i32
    %72 = arith.index_cast %c2_i32 : i32 to index
    %c0_25 = arith.constant 0 : index
    %c0_26 = arith.constant 0 : index
    %73 = vector.load %arg7[%72, %c0_25, %c0_26] : memref<8x8x512xf32, #tpu.memory_space<vmem>>, vector<1x8x512xf32>
    %74 = vector.shape_cast %73 : vector<1x8x512xf32> to vector<8x512xf32>
    %cst_27 = arith.constant dense<0.000000e+00> : vector<8x512xf32>
    %75 = tpu.matmul %71, %9, %cst_27 {dimension_numbers = #tpu.dot_dimension_numbers<[1], [0], [0], [1], [0, 0, 1, 1], [], []>} : vector<8x128xf32>, vector<128x512xf32>, vector<8x512xf32> -> vector<8x512xf32>
    %76 = arith.addf %74, %75 : vector<8x512xf32>
    %77 = vector.extract_strided_slice %76 {offsets = [0, 0], sizes = [8, 128], strides = [1, 1]} : vector<8x512xf32> to vector<8x128xf32>
    %78 = arith.negf %77 : vector<8x128xf32>
    %79 = math.exp %78 : vector<8x128xf32>
    %cst_28 = arith.constant 1.000000e+00 : f32
    %80 = vector.broadcast %cst_28 : f32 to vector<8x128xf32>
    %81 = arith.addf %80, %79 : vector<8x128xf32>
    %82 = arith.divf %80, %81 : vector<8x128xf32>
    %83 = vector.extract_strided_slice %76 {offsets = [0, 128], sizes = [8, 128], strides = [1, 1]} : vector<8x512xf32> to vector<8x128xf32>
    %84 = arith.negf %83 : vector<8x128xf32>
    %85 = math.exp %84 : vector<8x128xf32>
    %cst_29 = arith.constant 1.000000e+00 : f32
    %86 = vector.broadcast %cst_29 : f32 to vector<8x128xf32>
    %87 = arith.addf %86, %85 : vector<8x128xf32>
    %88 = arith.divf %86, %87 : vector<8x128xf32>
    %89 = vector.extract_strided_slice %76 {offsets = [0, 256], sizes = [8, 128], strides = [1, 1]} : vector<8x512xf32> to vector<8x128xf32>
    %90 = math.tanh %89 : vector<8x128xf32>
    %91 = vector.extract_strided_slice %76 {offsets = [0, 384], sizes = [8, 128], strides = [1, 1]} : vector<8x512xf32> to vector<8x128xf32>
    %92 = arith.negf %91 : vector<8x128xf32>
    %93 = math.exp %92 : vector<8x128xf32>
    %cst_30 = arith.constant 1.000000e+00 : f32
    %94 = vector.broadcast %cst_30 : f32 to vector<8x128xf32>
    %95 = arith.addf %94, %93 : vector<8x128xf32>
    %96 = arith.divf %94, %95 : vector<8x128xf32>
    %97 = arith.mulf %88, %69 : vector<8x128xf32>
    %98 = arith.mulf %82, %90 : vector<8x128xf32>
    %99 = arith.addf %97, %98 : vector<8x128xf32>
    %100 = math.tanh %99 : vector<8x128xf32>
    %101 = arith.mulf %96, %100 : vector<8x128xf32>
    %c3_i32 = arith.constant 3 : i32
    %102 = arith.index_cast %c3_i32 : i32 to index
    %c0_31 = arith.constant 0 : index
    %c0_32 = arith.constant 0 : index
    %103 = vector.load %arg7[%102, %c0_31, %c0_32] : memref<8x8x512xf32, #tpu.memory_space<vmem>>, vector<1x8x512xf32>
    %104 = vector.shape_cast %103 : vector<1x8x512xf32> to vector<8x512xf32>
    %cst_33 = arith.constant dense<0.000000e+00> : vector<8x512xf32>
    %105 = tpu.matmul %101, %9, %cst_33 {dimension_numbers = #tpu.dot_dimension_numbers<[1], [0], [0], [1], [0, 0, 1, 1], [], []>} : vector<8x128xf32>, vector<128x512xf32>, vector<8x512xf32> -> vector<8x512xf32>
    %106 = arith.addf %104, %105 : vector<8x512xf32>
    %107 = vector.extract_strided_slice %106 {offsets = [0, 0], sizes = [8, 128], strides = [1, 1]} : vector<8x512xf32> to vector<8x128xf32>
    %108 = arith.negf %107 : vector<8x128xf32>
    %109 = math.exp %108 : vector<8x128xf32>
    %cst_34 = arith.constant 1.000000e+00 : f32
    %110 = vector.broadcast %cst_34 : f32 to vector<8x128xf32>
    %111 = arith.addf %110, %109 : vector<8x128xf32>
    %112 = arith.divf %110, %111 : vector<8x128xf32>
    %113 = vector.extract_strided_slice %106 {offsets = [0, 128], sizes = [8, 128], strides = [1, 1]} : vector<8x512xf32> to vector<8x128xf32>
    %114 = arith.negf %113 : vector<8x128xf32>
    %115 = math.exp %114 : vector<8x128xf32>
    %cst_35 = arith.constant 1.000000e+00 : f32
    %116 = vector.broadcast %cst_35 : f32 to vector<8x128xf32>
    %117 = arith.addf %116, %115 : vector<8x128xf32>
    %118 = arith.divf %116, %117 : vector<8x128xf32>
    %119 = vector.extract_strided_slice %106 {offsets = [0, 256], sizes = [8, 128], strides = [1, 1]} : vector<8x512xf32> to vector<8x128xf32>
    %120 = math.tanh %119 : vector<8x128xf32>
    %121 = vector.extract_strided_slice %106 {offsets = [0, 384], sizes = [8, 128], strides = [1, 1]} : vector<8x512xf32> to vector<8x128xf32>
    %122 = arith.negf %121 : vector<8x128xf32>
    %123 = math.exp %122 : vector<8x128xf32>
    %cst_36 = arith.constant 1.000000e+00 : f32
    %124 = vector.broadcast %cst_36 : f32 to vector<8x128xf32>
    %125 = arith.addf %124, %123 : vector<8x128xf32>
    %126 = arith.divf %124, %125 : vector<8x128xf32>
    %127 = arith.mulf %118, %99 : vector<8x128xf32>
    %128 = arith.mulf %112, %120 : vector<8x128xf32>
    %129 = arith.addf %127, %128 : vector<8x128xf32>
    %130 = math.tanh %129 : vector<8x128xf32>
    %131 = arith.mulf %126, %130 : vector<8x128xf32>
    %c4_i32 = arith.constant 4 : i32
    %132 = arith.index_cast %c4_i32 : i32 to index
    %c0_37 = arith.constant 0 : index
    %c0_38 = arith.constant 0 : index
    %133 = vector.load %arg7[%132, %c0_37, %c0_38] : memref<8x8x512xf32, #tpu.memory_space<vmem>>, vector<1x8x512xf32>
    %134 = vector.shape_cast %133 : vector<1x8x512xf32> to vector<8x512xf32>
    %cst_39 = arith.constant dense<0.000000e+00> : vector<8x512xf32>
    %135 = tpu.matmul %131, %9, %cst_39 {dimension_numbers = #tpu.dot_dimension_numbers<[1], [0], [0], [1], [0, 0, 1, 1], [], []>} : vector<8x128xf32>, vector<128x512xf32>, vector<8x512xf32> -> vector<8x512xf32>
    %136 = arith.addf %134, %135 : vector<8x512xf32>
    %137 = vector.extract_strided_slice %136 {offsets = [0, 0], sizes = [8, 128], strides = [1, 1]} : vector<8x512xf32> to vector<8x128xf32>
    %138 = arith.negf %137 : vector<8x128xf32>
    %139 = math.exp %138 : vector<8x128xf32>
    %cst_40 = arith.constant 1.000000e+00 : f32
    %140 = vector.broadcast %cst_40 : f32 to vector<8x128xf32>
    %141 = arith.addf %140, %139 : vector<8x128xf32>
    %142 = arith.divf %140, %141 : vector<8x128xf32>
    %143 = vector.extract_strided_slice %136 {offsets = [0, 128], sizes = [8, 128], strides = [1, 1]} : vector<8x512xf32> to vector<8x128xf32>
    %144 = arith.negf %143 : vector<8x128xf32>
    %145 = math.exp %144 : vector<8x128xf32>
    %cst_41 = arith.constant 1.000000e+00 : f32
    %146 = vector.broadcast %cst_41 : f32 to vector<8x128xf32>
    %147 = arith.addf %146, %145 : vector<8x128xf32>
    %148 = arith.divf %146, %147 : vector<8x128xf32>
    %149 = vector.extract_strided_slice %136 {offsets = [0, 256], sizes = [8, 128], strides = [1, 1]} : vector<8x512xf32> to vector<8x128xf32>
    %150 = math.tanh %149 : vector<8x128xf32>
    %151 = vector.extract_strided_slice %136 {offsets = [0, 384], sizes = [8, 128], strides = [1, 1]} : vector<8x512xf32> to vector<8x128xf32>
    %152 = arith.negf %151 : vector<8x128xf32>
    %153 = math.exp %152 : vector<8x128xf32>
    %cst_42 = arith.constant 1.000000e+00 : f32
    %154 = vector.broadcast %cst_42 : f32 to vector<8x128xf32>
    %155 = arith.addf %154, %153 : vector<8x128xf32>
    %156 = arith.divf %154, %155 : vector<8x128xf32>
    %157 = arith.mulf %148, %129 : vector<8x128xf32>
    %158 = arith.mulf %142, %150 : vector<8x128xf32>
    %159 = arith.addf %157, %158 : vector<8x128xf32>
    %160 = math.tanh %159 : vector<8x128xf32>
    %161 = arith.mulf %156, %160 : vector<8x128xf32>
    %c5_i32 = arith.constant 5 : i32
    %162 = arith.index_cast %c5_i32 : i32 to index
    %c0_43 = arith.constant 0 : index
    %c0_44 = arith.constant 0 : index
    %163 = vector.load %arg7[%162, %c0_43, %c0_44] : memref<8x8x512xf32, #tpu.memory_space<vmem>>, vector<1x8x512xf32>
    %164 = vector.shape_cast %163 : vector<1x8x512xf32> to vector<8x512xf32>
    %cst_45 = arith.constant dense<0.000000e+00> : vector<8x512xf32>
    %165 = tpu.matmul %161, %9, %cst_45 {dimension_numbers = #tpu.dot_dimension_numbers<[1], [0], [0], [1], [0, 0, 1, 1], [], []>} : vector<8x128xf32>, vector<128x512xf32>, vector<8x512xf32> -> vector<8x512xf32>
    %166 = arith.addf %164, %165 : vector<8x512xf32>
    %167 = vector.extract_strided_slice %166 {offsets = [0, 0], sizes = [8, 128], strides = [1, 1]} : vector<8x512xf32> to vector<8x128xf32>
    %168 = arith.negf %167 : vector<8x128xf32>
    %169 = math.exp %168 : vector<8x128xf32>
    %cst_46 = arith.constant 1.000000e+00 : f32
    %170 = vector.broadcast %cst_46 : f32 to vector<8x128xf32>
    %171 = arith.addf %170, %169 : vector<8x128xf32>
    %172 = arith.divf %170, %171 : vector<8x128xf32>
    %173 = vector.extract_strided_slice %166 {offsets = [0, 128], sizes = [8, 128], strides = [1, 1]} : vector<8x512xf32> to vector<8x128xf32>
    %174 = arith.negf %173 : vector<8x128xf32>
    %175 = math.exp %174 : vector<8x128xf32>
    %cst_47 = arith.constant 1.000000e+00 : f32
    %176 = vector.broadcast %cst_47 : f32 to vector<8x128xf32>
    %177 = arith.addf %176, %175 : vector<8x128xf32>
    %178 = arith.divf %176, %177 : vector<8x128xf32>
    %179 = vector.extract_strided_slice %166 {offsets = [0, 256], sizes = [8, 128], strides = [1, 1]} : vector<8x512xf32> to vector<8x128xf32>
    %180 = math.tanh %179 : vector<8x128xf32>
    %181 = vector.extract_strided_slice %166 {offsets = [0, 384], sizes = [8, 128], strides = [1, 1]} : vector<8x512xf32> to vector<8x128xf32>
    %182 = arith.negf %181 : vector<8x128xf32>
    %183 = math.exp %182 : vector<8x128xf32>
    %cst_48 = arith.constant 1.000000e+00 : f32
    %184 = vector.broadcast %cst_48 : f32 to vector<8x128xf32>
    %185 = arith.addf %184, %183 : vector<8x128xf32>
    %186 = arith.divf %184, %185 : vector<8x128xf32>
    %187 = arith.mulf %178, %159 : vector<8x128xf32>
    %188 = arith.mulf %172, %180 : vector<8x128xf32>
    %189 = arith.addf %187, %188 : vector<8x128xf32>
    %190 = math.tanh %189 : vector<8x128xf32>
    %191 = arith.mulf %186, %190 : vector<8x128xf32>
    %c6_i32 = arith.constant 6 : i32
    %192 = arith.index_cast %c6_i32 : i32 to index
    %c0_49 = arith.constant 0 : index
    %c0_50 = arith.constant 0 : index
    %193 = vector.load %arg7[%192, %c0_49, %c0_50] : memref<8x8x512xf32, #tpu.memory_space<vmem>>, vector<1x8x512xf32>
    %194 = vector.shape_cast %193 : vector<1x8x512xf32> to vector<8x512xf32>
    %cst_51 = arith.constant dense<0.000000e+00> : vector<8x512xf32>
    %195 = tpu.matmul %191, %9, %cst_51 {dimension_numbers = #tpu.dot_dimension_numbers<[1], [0], [0], [1], [0, 0, 1, 1], [], []>} : vector<8x128xf32>, vector<128x512xf32>, vector<8x512xf32> -> vector<8x512xf32>
    %196 = arith.addf %194, %195 : vector<8x512xf32>
    %197 = vector.extract_strided_slice %196 {offsets = [0, 0], sizes = [8, 128], strides = [1, 1]} : vector<8x512xf32> to vector<8x128xf32>
    %198 = arith.negf %197 : vector<8x128xf32>
    %199 = math.exp %198 : vector<8x128xf32>
    %cst_52 = arith.constant 1.000000e+00 : f32
    %200 = vector.broadcast %cst_52 : f32 to vector<8x128xf32>
    %201 = arith.addf %200, %199 : vector<8x128xf32>
    %202 = arith.divf %200, %201 : vector<8x128xf32>
    %203 = vector.extract_strided_slice %196 {offsets = [0, 128], sizes = [8, 128], strides = [1, 1]} : vector<8x512xf32> to vector<8x128xf32>
    %204 = arith.negf %203 : vector<8x128xf32>
    %205 = math.exp %204 : vector<8x128xf32>
    %cst_53 = arith.constant 1.000000e+00 : f32
    %206 = vector.broadcast %cst_53 : f32 to vector<8x128xf32>
    %207 = arith.addf %206, %205 : vector<8x128xf32>
    %208 = arith.divf %206, %207 : vector<8x128xf32>
    %209 = vector.extract_strided_slice %196 {offsets = [0, 256], sizes = [8, 128], strides = [1, 1]} : vector<8x512xf32> to vector<8x128xf32>
    %210 = math.tanh %209 : vector<8x128xf32>
    %211 = vector.extract_strided_slice %196 {offsets = [0, 384], sizes = [8, 128], strides = [1, 1]} : vector<8x512xf32> to vector<8x128xf32>
    %212 = arith.negf %211 : vector<8x128xf32>
    %213 = math.exp %212 : vector<8x128xf32>
    %cst_54 = arith.constant 1.000000e+00 : f32
    %214 = vector.broadcast %cst_54 : f32 to vector<8x128xf32>
    %215 = arith.addf %214, %213 : vector<8x128xf32>
    %216 = arith.divf %214, %215 : vector<8x128xf32>
    %217 = arith.mulf %208, %189 : vector<8x128xf32>
    %218 = arith.mulf %202, %210 : vector<8x128xf32>
    %219 = arith.addf %217, %218 : vector<8x128xf32>
    %220 = math.tanh %219 : vector<8x128xf32>
    %221 = arith.mulf %216, %220 : vector<8x128xf32>
    %c7_i32 = arith.constant 7 : i32
    %222 = arith.index_cast %c7_i32 : i32 to index
    %c0_55 = arith.constant 0 : index
    %c0_56 = arith.constant 0 : index
    %223 = vector.load %arg7[%222, %c0_55, %c0_56] : memref<8x8x512xf32, #tpu.memory_space<vmem>>, vector<1x8x512xf32>
    %224 = vector.shape_cast %223 : vector<1x8x512xf32> to vector<8x512xf32>
    %cst_57 = arith.constant dense<0.000000e+00> : vector<8x512xf32>
    %225 = tpu.matmul %221, %9, %cst_57 {dimension_numbers = #tpu.dot_dimension_numbers<[1], [0], [0], [1], [0, 0, 1, 1], [], []>} : vector<8x128xf32>, vector<128x512xf32>, vector<8x512xf32> -> vector<8x512xf32>
    %226 = arith.addf %224, %225 : vector<8x512xf32>
    %227 = vector.extract_strided_slice %226 {offsets = [0, 0], sizes = [8, 128], strides = [1, 1]} : vector<8x512xf32> to vector<8x128xf32>
    %228 = arith.negf %227 : vector<8x128xf32>
    %229 = math.exp %228 : vector<8x128xf32>
    %cst_58 = arith.constant 1.000000e+00 : f32
    %230 = vector.broadcast %cst_58 : f32 to vector<8x128xf32>
    %231 = arith.addf %230, %229 : vector<8x128xf32>
    %232 = arith.divf %230, %231 : vector<8x128xf32>
    %233 = vector.extract_strided_slice %226 {offsets = [0, 128], sizes = [8, 128], strides = [1, 1]} : vector<8x512xf32> to vector<8x128xf32>
    %234 = arith.negf %233 : vector<8x128xf32>
    %235 = math.exp %234 : vector<8x128xf32>
    %cst_59 = arith.constant 1.000000e+00 : f32
    %236 = vector.broadcast %cst_59 : f32 to vector<8x128xf32>
    %237 = arith.addf %236, %235 : vector<8x128xf32>
    %238 = arith.divf %236, %237 : vector<8x128xf32>
    %239 = vector.extract_strided_slice %226 {offsets = [0, 256], sizes = [8, 128], strides = [1, 1]} : vector<8x512xf32> to vector<8x128xf32>
    %240 = math.tanh %239 : vector<8x128xf32>
    %241 = vector.extract_strided_slice %226 {offsets = [0, 384], sizes = [8, 128], strides = [1, 1]} : vector<8x512xf32> to vector<8x128xf32>
    %242 = arith.negf %241 : vector<8x128xf32>
    %243 = math.exp %242 : vector<8x128xf32>
    %cst_60 = arith.constant 1.000000e+00 : f32
    %244 = vector.broadcast %cst_60 : f32 to vector<8x128xf32>
    %245 = arith.addf %244, %243 : vector<8x128xf32>
    %246 = arith.divf %244, %245 : vector<8x128xf32>
    %247 = arith.mulf %238, %219 : vector<8x128xf32>
    %248 = arith.mulf %232, %240 : vector<8x128xf32>
    %249 = arith.addf %247, %248 : vector<8x128xf32>
    %250 = math.tanh %249 : vector<8x128xf32>
    %251 = arith.mulf %246, %250 : vector<8x128xf32>
    %c8_i32 = arith.constant 8 : i32
    %c0_61 = arith.constant 0 : index
    %c0_62 = arith.constant 0 : index
    %252 = vector.load %arg4[%c0_61, %c0_62] : memref<128x128xf32, #tpu.memory_space<vmem>>, vector<128x128xf32>
    %cst_63 = arith.constant dense<0.000000e+00> : vector<8x128xf32>
    %253 = tpu.matmul %251, %252, %cst_63 {dimension_numbers = #tpu.dot_dimension_numbers<[1], [0], [0], [1], [0, 0, 1, 1], [], []>} : vector<8x128xf32>, vector<128x128xf32>, vector<8x128xf32> -> vector<8x128xf32>
    %c0_64 = arith.constant 0 : index
    %c0_65 = arith.constant 0 : index
    %254 = vector.load %arg5[%c0_64, %c0_65] : memref<1x128xf32, #tpu.memory_space<vmem>>, vector<1x128xf32>
    %255 = vector.broadcast %254 : vector<1x128xf32> to vector<8x128xf32>
    %256 = arith.addf %253, %255 : vector<8x128xf32>
    %cst_66 = arith.constant 0.000000e+00 : f32
    %257 = vector.broadcast %cst_66 : f32 to vector<8x128xf32>
    %258 = arith.maximumf %256, %257 : vector<8x128xf32>
    %259 = tpu.iota {dimensions = array<i32: 1>} : vector<8x128xi32>
    %c8_i32_67 = arith.constant 8 : i32
    %260 = vector.broadcast %c8_i32_67 : i32 to vector<8x128xi32>
    %261 = arith.cmpi slt, %259, %260 : vector<8x128xi32>
    %cst_68 = arith.constant -1.000000e+30 : f32
    %262 = vector.broadcast %cst_68 : f32 to vector<8x128xf32>
    %263 = arith.select %261, %258, %262 : vector<8x128xi1>, vector<8x128xf32>
    %cst_69 = arith.constant dense<0xFF800000> : vector<8xf32>
    %264 = vector.multi_reduction <maximumf>, %263, %cst_69 [1] : vector<8x128xf32> to vector<8xf32>
    %265 = vector.shape_cast %264 : vector<8xf32> to vector<8x1xf32>
    %266 = vector.broadcast %265 : vector<8x1xf32> to vector<8x128xf32>
    %267 = arith.subf %263, %266 : vector<8x128xf32>
    %268 = math.exp %267 : vector<8x128xf32>
    %cst_70 = arith.constant dense<0.000000e+00> : vector<8xf32>
    %269 = vector.multi_reduction <add>, %268, %cst_70 [1] : vector<8x128xf32> to vector<8xf32>
    %270 = vector.shape_cast %269 : vector<8xf32> to vector<8x1xf32>
    %271 = math.log %270 : vector<8x1xf32>
    %272 = arith.addf %271, %265 : vector<8x1xf32>
    %273 = vector.broadcast %272 : vector<8x1xf32> to vector<8x128xf32>
    %274 = arith.subf %263, %273 : vector<8x128xf32>
    %c0_71 = arith.constant 0 : index
    %c0_72 = arith.constant 0 : index
    %275 = vector.load %arg6[%c0_71, %c0_72] : memref<8x128xf32, #tpu.memory_space<vmem>>, vector<8x128xf32>
    tpu.vector_store %arg6[%c0_71, %c0_72], %274 {strides = array<i32>} : memref<8x128xf32, #tpu.memory_space<vmem>>, vector<8x128xf32>,
    return
  }
}

</mosaic_0001>

<bundles_post_ra>
// kernel: tpu_custom_call.1
= control target key start
LH: loop header
LB: loop body
LE: loop exit
PB: predicated region body
PF: predicated region fallthrough
CT: control target
= control target key end

     0   :  { %11 = vsyncpa [#allocation4], 0  ;;  %s3526_s0 = inlined_call_operand.hbm [shape: f32[8,8,16], index: 0, kind: input, shape index: {}]   ;;  %s3527_s1 = inlined_call_operand.hbm [shape: f32[16,512], index: 1, kind: input, shape index: {}]   ;;  %s3528_s2 = inlined_call_operand.hbm [shape: f32[128,512], index: 2, kind: input, shape index: {}]   ;;  %s3529_s3 = inlined_call_operand.vmem [shape: f32[1,512], index: 3, kind: input, shape index: {}]   ;;  %s3530_s4 = inlined_call_operand.hbm [shape: f32[128,128], index: 4, kind: input, shape index: {}]   ;;  %s3531_s5 = inlined_call_operand.vmem [shape: f32[1,128], index: 5, kind: input, shape index: {}]   ;;  %s3532_s6 = inlined_call_operand.hbm [shape: f32[8,128], index: 6, kind: output, shape index: {}]  }
   0x1   :  { %12 = vsyncpa [#allocation7], 0 }
   0x2   :  { %13 = vsyncpa [#allocation10], 0 }
   0x3   :  { %14 = vsyncpa [#allocation5], 0  ;;  %s2953_s21 = smov [#allocation6]   ;;  %s2835_s25 = scalar_lea.hbm %s3527_s1, 1024 }
   0x4   :  { %s32_s22 = sshll.u32 %s2953_s21, 4  ;;  %p2836_p0 = scmp.ne.s32.totalorder %s3527_s1, %s2835_s25  ;;  %s33_s22 = int_to_ptr.vmem [resolvable:$true] %s32_s22 }
   0x5   :  { %p2839_p1 = scmp.lt.u32.totalorder %s2835_s25, %s3527_s1 }
   0x7   :  { %p2841_p2 = pnand %p2839_p1, %p2836_p0 }
   0x9   :  { %2844 = shalt.err (!%p2841_p2)
}
   0xa   :  { %s2845_s30 = scalar_lea.vmem %s33_s22, 1024  ;;  %p2850_p4 = scmp.lt.s32.totalorder %s33_s22, %s33_s22 }
   0xb   :  { %p2846_p3 = scmp.ne.s32.totalorder %s33_s22, %s2845_s30  ;;  %p2851_p5 = scmp.lt.s32.totalorder %s2845_s30, %s2845_s30 }
   0xd   :  { %p2852_p6 = por %p2851_p5, %p2850_p4 }
   0xf   :  { %p2853_p7 = pnand %p2852_p6, %p2846_p3 }
  0x11   :  { %2856 = shalt.err (!%p2853_p7)
}
  0x12   :  { %s2954_s7 = smov 512   ;;  %s2955_s8 = smov 32  }
  0x13   :  { %38 = dma.hbm_to_vmem [thread:$0]  %s3527_s1, 1024, %s33_s22, [#allocation7], %s2954_s7, %s2954_s7, %s2955_s8  }
  0x14   :  { %s2956_s11 = smov [#allocation3]   ;;  %s2857_s15 = scalar_lea.hbm %s3526_s0, 1024 }
  0x15   :  { %s20_s12 = sshll.u32 %s2956_s11, 4  ;;  %p2858_p8 = scmp.ne.s32.totalorder %s3526_s0, %s2857_s15  ;;  %s21_s12 = int_to_ptr.vmem [resolvable:$true] %s20_s12 }
  0x16   :  { %p2861_p9 = scmp.lt.u32.totalorder %s2857_s15, %s3526_s0 }
  0x18   :  { %p2863_p10 = pnand %p2861_p9, %p2858_p8 }
  0x1a   :  { %2866 = shalt.err (!%p2863_p10)
}
  0x1b   :  { %s2867_s20 = scalar_lea.vmem %s21_s12, 1024  ;;  %p2872_p12 = scmp.lt.s32.totalorder %s21_s12, %s21_s12 }
  0x1c   :  { %p2868_p11 = scmp.ne.s32.totalorder %s21_s12, %s2867_s20  ;;  %p2873_p13 = scmp.lt.s32.totalorder %s2867_s20, %s2867_s20 }
  0x1e   :  { %p2874_p0 = por %p2873_p13, %p2872_p12 }
  0x20   :  { %p2875_p1 = pnand %p2874_p0, %p2868_p11 }
  0x22   :  { %2878 = shalt.err (!%p2875_p1)
}
  0x23   :  { %s2957_s1 = smov 128   ;;  %s2958_s21 = smov 8  }
  0x24   :  { %26 = dma.hbm_to_vmem [thread:$0]  %s3526_s0, 1024, %s21_s12, [#allocation4], %s2957_s1, %s2957_s1, %s2958_s21  }
  0x25   :  { %s2959_s24 = smov [#allocation8]   ;;  %s2960_s26 = smov [#allocation9]  }
  0x26   :  { %s44_s25 = sshll.u32 %s2959_s24, 4  ;;  %s58_s27 = sshll.u32 %s2960_s26, 4  ;;  %s45_s25 = int_to_ptr.vmem [resolvable:$true] %s44_s25  ;;  %s3030_s27 = int_to_ptr.vmem [resolvable:$true] %s58_s27 }
  0x27   :  { %s2879_s30 = scalar_lea.hbm %s3528_s2, 8192 }
  0x28   :  { %p2880_p2 = scmp.ne.s32.totalorder %s3528_s2, %s2879_s30  ;;  %p2883_p3 = scmp.lt.u32.totalorder %s2879_s30, %s3528_s2 }
  0x2a   :  { %p2885_p4 = pnand %p2883_p3, %p2880_p2 }
  0x2c   :  { %2888 = shalt.err (!%p2885_p4)
}
  0x2d   :  { %s2889_s0 = scalar_lea.vmem %s45_s25, 8192  ;;  %p2894_p6 = scmp.lt.s32.totalorder %s45_s25, %s45_s25 }
  0x2e   :  { %p2890_p5 = scmp.ne.s32.totalorder %s45_s25, %s2889_s0  ;;  %p2895_p7 = scmp.lt.s32.totalorder %s2889_s0, %s2889_s0 }
  0x30   :  { %p2896_p8 = por %p2895_p7, %p2894_p6 }
  0x32   :  { %p2897_p9 = pnand %p2896_p8, %p2890_p5 }
  0x34   :  { %2900 = shalt.err (!%p2897_p9)
}
  0x35   :  { %50 = dma.hbm_to_vmem [thread:$0]  %s3528_s2, 8192, %s45_s25, [#allocation7], %s2954_s7, %s2954_s7, %s2955_s8  }
  0x36   :  { %s2901_s17 = scalar_lea.hbm %s3530_s4, 2048 }
  0x37   :  { %p2902_p10 = scmp.ne.s32.totalorder %s3530_s4, %s2901_s17  ;;  %p2905_p11 = scmp.lt.u32.totalorder %s2901_s17, %s3530_s4 }
  0x39   :  { %p2907_p12 = pnand %p2905_p11, %p2902_p10 }
  0x3b   :  { %2910 = shalt.err (!%p2907_p12)
}
  0x3c   :  { %s2911_s23 = scalar_lea.vmem %s3030_s27, 2048  ;;  %p2916_p0 = scmp.lt.s32.totalorder %s3030_s27, %s3030_s27 }
  0x3d   :  { %p2912_p13 = scmp.ne.s32.totalorder %s3030_s27, %s2911_s23  ;;  %p2917_p1 = scmp.lt.s32.totalorder %s2911_s23, %s2911_s23 }
  0x3f   :  { %p2918_p2 = por %p2917_p1, %p2916_p0 }
  0x41   :  { %p2919_p3 = pnand %p2918_p2, %p2912_p13 }
  0x43   :  { %2922 = shalt.err (!%p2919_p3)
}
  0x44   :  { %64 = dma.hbm_to_vmem [thread:$0]  %s3530_s4, 2048, %s3030_s27, [#allocation10], %s2957_s1, %s2957_s1, %s2958_s21  }
  0x45   :  { %2945 = dma.done.wait [#allocation4], 1024  }
  0x46   :  { %2946 = vsyncadd [#allocation4], 4294966272 }
  0x47   :  { %2947 = dma.done.wait [#allocation7], 9216  }
  0x48   :  { %2948 = vsyncadd [#allocation7], 4294958080 }
  0x49   :  { %2949 = dma.done.wait [#allocation10], 2048  }
  0x4a   :  { %2950 = vsyncadd [#allocation10], 4294965248  ;;  %v2961_v0 = vmov 0.0   ;;  %v88_v1 = vld [vmem:[#allocation6 + $0x8] sm:$0xff]  ;;  %v90_v3 = vld [vmem:[#allocation6 + $0x18] sm:$0xff]  ;;  %vm117_vm0 = vcmask 130048  }
  0x4b   :  { %206 = vmatprep.mubr.f32.mxu0 %v2961_v0  ;;  %319 = vmatprep.mubr.f32.mxu1 %v2961_v0  ;;  %v92_v2 = vld [vmem:[#allocation6 + $0x28] sm:$0xff]  ;;  %v94_v5 = vld [vmem:[#allocation6 + $0x38] sm:$0xff]  ;;  %v87_v6 = vld [vmem:[#allocation6] sm:$0xff]  ;;  %vm2963_vm1 = vmmov 0  }
  0x4c   :  { %v2083_v4 = vpack.c.bf16 %v92_v2, %v88_v1  ;;  %v91_v7 = vld [vmem:[#allocation6 + $0x20] sm:$0xff]  ;;  %v2087_v8 = vpack.c.bf16 %v94_v5, %v90_v3  ;;  %v89_v10 = vld [vmem:[#allocation6 + $0x10] sm:$0xff]  ;;  %v401_v14 = vld [vmem:[#allocation8 + $0x8] sm:$0xff] }
  0x4d   :  { %v2085_v9 = vpack.c.bf16 %v91_v7, %v87_v6  ;;  %v93_v11 = vld [vmem:[#allocation6 + $0x30] sm:$0xff]  ;;  %v79_v12 = vld [vmem:[#allocation3] sm:$0xff]  ;;  %v405_v15 = vld [vmem:[#allocation8 + $0x28] sm:$0xff] }
  0x4e   :  { %2084 = vmatprep.subr.bf16.mxu0 %v2083_v4  ;;  %v2089_v13 = vpack.c.bf16 %v93_v11, %v89_v10  ;;  %v403_v16 = vld [vmem:[#allocation8 + $0x18] sm:$0xff]  ;;  %2088 = vmatprep.subr.bf16.mxu1 %v2087_v8  ;;  %v3069_v17 = vpack.c.bf16 %v405_v15, %v401_v14  ;;  %v400_v19 = vld [vmem:[#allocation8] sm:$0xff]  ;;  %v402_v23 = vld [vmem:[#allocation8 + $0x10] sm:$0xff] }
  0x4f   :  { %2086 = vmatpush1.bf16.msra.mxu0 %v2085_v9  ;;  %v407_v18 = vld [vmem:[#allocation8 + $0x38] sm:$0xff]  ;;  %v404_v20 = vld [vmem:[#allocation8 + $0x20] sm:$0xff]  ;;  %v406_v24 = vld [vmem:[#allocation8 + $0x30] sm:$0xff] }
  0x50   :  { %2090 = vmatpush1.bf16.msra.mxu1 %v2089_v13  ;;  %v3071_v21 = vpack.c.bf16 %v407_v18, %v403_v16  ;;  %v3073_v22 = vpack.c.bf16 %v404_v20, %v400_v19  ;;  %2092 = vmatprep.subr.bf16.mxu0 %v3069_v17  ;;  %v3076_v25 = vpack.c.bf16 %v406_v24, %v402_v23  ;;  %v409_v26 = vld [vmem:[#allocation8 + $0x48] sm:$0xff]  ;;  %v411_v28 = vld [vmem:[#allocation8 + $0x58] sm:$0xff]  ;;  %v408_v31 = vld [vmem:[#allocation8 + $0x40] sm:$0xff] }
  0x51   :  { %v413_v27 = vld [vmem:[#allocation8 + $0x68] sm:$0xff]  ;;  %v415_v30 = vld [vmem:[#allocation8 + $0x78] sm:$0xff]  ;;  %v412_v32 = vld [vmem:[#allocation8 + $0x60] sm:$0xff] }
  0x52   :  { %1990 = vmatmul.mubr.msk.f32.vlgmr.msra.gmra.mrb[0].mxu0 %vm117_vm0, %v79_v12  ;;  %2124 = vmatprep.subr.bf16.mxu1 %v3071_v21  ;;  %v3080_v29 = vpack.c.bf16 %v413_v27, %v409_v26  ;;  %v80_v33 = vld [vmem:[#allocation3 + $0x8] sm:$0xff]  ;;  %v3084_v34 = vpack.c.bf16 %v415_v30, %v411_v28  ;;  %v3086_v35 = vpack.c.bf16 %v412_v32, %v408_v31  ;;  %v410_v36 = vld [vmem:[#allocation8 + $0x50] sm:$0xff]  ;;  %v419_v41 = vld [vmem:[#allocation8 + $0x98] sm:$0xff] }
  0x53   :  { %1998 = vmatmul.mubr.msk.f32.vlgmr.msra.gmra.mrb[0].mxu1 %vm117_vm0, %v79_v12  ;;  %2094 = vmatpush1.bf16.msra.mxu0 %v3073_v22  ;;  %v414_v37 = vld [vmem:[#allocation8 + $0x70] sm:$0xff]  ;;  %v417_v39 = vld [vmem:[#allocation8 + $0x88] sm:$0xff]  ;;  %v423_v43 = vld [vmem:[#allocation8 + $0xb8] sm:$0xff] }
  0x54   :  { %2126 = vmatpush1.bf16.msra.mxu1 %v3076_v25  ;;  %212 = vmatprep.mubr.f32.mxu0 %v2961_v0  ;;  %v3090_v38 = vpack.c.bf16 %v414_v37, %v410_v36  ;;  %v421_v40 = vld [vmem:[#allocation8 + $0xa8] sm:$0xff]  ;;  %v416_v44 = vld [vmem:[#allocation8 + $0x80] sm:$0xff]  ;;  %v81_v46 = vld [vmem:[#allocation3 + $0x10] sm:$0xff]  ;;  %v3098_v47 = vpack.c.bf16 %v423_v43, %v419_v41 }
  0x55   :  { %325 = vmatprep.mubr.f32.mxu1 %v2961_v0  ;;  %2096 = vmatprep.subr.bf16.mxu0 %v3080_v29  ;;  %v3094_v42 = vpack.c.bf16 %v421_v40, %v417_v39  ;;  %v420_v45 = vld [vmem:[#allocation8 + $0xa0] sm:$0xff]  ;;  %v418_v48 = vld [vmem:[#allocation8 + $0x90] sm:$0xff]  ;;  %v425_v51 = vld [vmem:[#allocation8 + $0xc8] sm:$0xff] }
  0x56   :  { %1991 = vmatmul.mubr.msk.f32.gmra.mrb[2].mxu0 %vm117_vm0, %v80_v33  ;;  %2128 = vmatprep.subr.bf16.mxu1 %v3084_v34  ;;  %v422_v49 = vld [vmem:[#allocation8 + $0xb0] sm:$0xff]  ;;  %v3102_v50 = vpack.c.bf16 %v420_v45, %v416_v44  ;;  %v429_v52 = vld [vmem:[#allocation8 + $0xe8] sm:$0xff]  ;;  %v427_v53 = vld [vmem:[#allocation8 + $0xd8] sm:$0xff] }
  0x57   :  { %1999 = vmatmul.mubr.msk.f32.gmra.mrb[2].mxu1 %vm117_vm0, %v80_v33  ;;  %2098 = vmatpush1.bf16.msra.mxu0 %v3086_v35  ;;  %v3106_v54 = vpack.c.bf16 %v422_v49, %v418_v48  ;;  %v431_v55 = vld [vmem:[#allocation8 + $0xf8] sm:$0xff]  ;;  %v424_v56 = vld [vmem:[#allocation8 + $0xc0] sm:$0xff]  ;;  %v3110_v58 = vpack.c.bf16 %v429_v52, %v425_v51  ;;  %v426_v59 = vld [vmem:[#allocation8 + $0xd0] sm:$0xff] }
  0x58   :  { %2130 = vmatpush1.bf16.msra.mxu1 %v3090_v38  ;;  %218 = vmatprep.mubr.f32.mxu0 %v2961_v0  ;;  %v428_v57 = vld [vmem:[#allocation8 + $0xe0] sm:$0xff]  ;;  %v430_v60 = vld [vmem:[#allocation8 + $0xf0] sm:$0xff]  ;;  %v3114_v61 = vpack.c.bf16 %v431_v55, %v427_v53  ;;  %v433_v62 = vld [vmem:[#allocation8 + $0x108] sm:$0xff] }
  0x59   :  { %331 = vmatprep.mubr.f32.mxu1 %v2961_v0  ;;  %2100 = vmatprep.subr.bf16.mxu0 %v3094_v42  ;;  %v437_v63 = vld [vmem:[#allocation8 + $0x128] sm:$0xff]  ;;  %v82_v1 = vld [vmem:[#allocation3 + $0x18] sm:$0xff]  ;;  %v3118_v2 = vpack.c.bf16 %v428_v57, %v424_v56  ;;  %v3122_v5 = vpack.c.bf16 %v430_v60, %v426_v59  ;;  %v432_v6 = vld [vmem:[#allocation8 + $0x100] sm:$0xff] }
  0x5a   :  { %1992 = vmatmul.mubr.msk.f32.gmra.mrb[4].mxu0 %vm117_vm0, %v81_v46  ;;  %2132 = vmatprep.subr.bf16.mxu1 %v3098_v47  ;;  %v435_v3 = vld [vmem:[#allocation8 + $0x118] sm:$0xff]  ;;  %v436_v7 = vld [vmem:[#allocation8 + $0x120] sm:$0xff]  ;;  %v3126_v8 = vpack.c.bf16 %v437_v63, %v433_v62  ;;  %v434_v9 = vld [vmem:[#allocation8 + $0x110] sm:$0xff] }
  0x5b   :  { %2000 = vmatmul.mubr.msk.f32.gmra.mrb[4].mxu1 %vm117_vm0, %v81_v46  ;;  %2102 = vmatpush1.bf16.msra.mxu0 %v3102_v50  ;;  %v439_v4 = vld [vmem:[#allocation8 + $0x138] sm:$0xff]  ;;  %v438_v10 = vld [vmem:[#allocation8 + $0x130] sm:$0xff]  ;;  %v441_v12 = vld [vmem:[#allocation8 + $0x148] sm:$0xff]  ;;  %v3134_v15 = vpack.c.bf16 %v436_v7, %v432_v6  ;;  %v97_v7 = vlaneseq }
  0x5c   :  { %2134 = vmatpush1.bf16.msra.mxu1 %v3106_v54  ;;  %224 = vmatprep.mubr.f32.mxu0 %v2961_v0  ;;  %v3130_v11 = vpack.c.bf16 %v439_v4, %v435_v3  ;;  %v445_v13 = vld [vmem:[#allocation8 + $0x168] sm:$0xff]  ;;  %v83_v14 = vld [vmem:[#allocation3 + $0x20] sm:$0xff]  ;;  %v443_v16 = vld [vmem:[#allocation8 + $0x158] sm:$0xff]  ;;  %v3138_v19 = vpack.c.bf16 %v438_v10, %v434_v9 }
  0x5d   :  { %337 = vmatprep.mubr.f32.mxu1 %v2961_v0  ;;  %2104 = vmatprep.subr.bf16.mxu0 %v3110_v58  ;;  %v447_v18 = vld [vmem:[#allocation8 + $0x178] sm:$0xff]  ;;  %v440_v20 = vld [vmem:[#allocation8 + $0x140] sm:$0xff]  ;;  %v3142_v24 = vpack.c.bf16 %v445_v13, %v441_v12  ;;  %v442_v26 = vld [vmem:[#allocation8 + $0x150] sm:$0xff]  ;;  %v98_v9 = vshrl.u32 %v97_v7, 7 }
  0x5e   :  { %1993 = vmatmul.mubr.msk.f32.gmra.mrb[6].mxu0 %vm117_vm0, %v82_v1  ;;  %2136 = vmatprep.subr.bf16.mxu1 %v3114_v61  ;;  %v444_v23 = vld [vmem:[#allocation8 + $0x160] sm:$0xff]  ;;  %v446_v27 = vld [vmem:[#allocation8 + $0x170] sm:$0xff]  ;;  %v3146_v28 = vpack.c.bf16 %v447_v18, %v443_v16  ;;  %v449_v30 = vld [vmem:[#allocation8 + $0x188] sm:$0xff] }
  0x5f   :  { %2001 = vmatmul.mubr.msk.f32.gmra.mrb[6].mxu1 %vm117_vm0, %v82_v1  ;;  %2106 = vmatpush1.bf16.msra.mxu0 %v3118_v2  ;;  %v453_v31 = vld [vmem:[#allocation8 + $0x1a8] sm:$0xff]  ;;  %v3150_v33 = vpack.c.bf16 %v444_v23, %v440_v20  ;;  %v451_v36 = vld [vmem:[#allocation8 + $0x198] sm:$0xff]  ;;  %v3154_v39 = vpack.c.bf16 %v446_v27, %v442_v26  ;;  %v448_v40 = vld [vmem:[#allocation8 + $0x180] sm:$0xff]  ;;  %v99_v10 = vsub.s32 0, %v98_v9  ;;  %v103_v13 = vsub.s32 1, %v98_v9 }
  0x60   :  { %2138 = vmatpush1.bf16.msra.mxu1 %v3122_v5  ;;  %230 = vmatprep.mubr.f32.mxu0 %v2961_v0  ;;  %v84_v32 = vld [vmem:[#allocation3 + $0x28] sm:$0xff]  ;;  %v455_v37 = vld [vmem:[#allocation8 + $0x1b8] sm:$0xff]  ;;  %v452_v41 = vld [vmem:[#allocation8 + $0x1a0] sm:$0xff]  ;;  %v3158_v43 = vpack.c.bf16 %v453_v31, %v449_v30  ;;  %v111_v20 = vsub.s32 3, %v98_v9 }
  0x61   :  { %343 = vmatprep.mubr.f32.mxu1 %v2961_v0  ;;  %2108 = vmatprep.subr.bf16.mxu0 %v3126_v8  ;;  %v450_v44 = vld [vmem:[#allocation8 + $0x190] sm:$0xff]  ;;  %v3162_v46 = vpack.c.bf16 %v455_v37, %v451_v36  ;;  %v457_v48 = vld [vmem:[#allocation8 + $0x1c8] sm:$0xff]  ;;  %v3166_v52 = vpack.c.bf16 %v452_v41, %v448_v40  ;;  %v459_v53 = vld [vmem:[#allocation8 + $0x1d8] sm:$0xff]  ;;  %v107_v40 = vsub.s32 2, %v98_v9 }
  0x62   :  { %1994 = vmatmul.mubr.msk.f32.gmra.mrb[8].mxu0 %vm117_vm0, %v83_v14  ;;  %2140 = vmatprep.subr.bf16.mxu1 %v3130_v11  ;;  %v454_v45 = vld [vmem:[#allocation8 + $0x1b0] sm:$0xff]  ;;  %v461_v49 = vld [vmem:[#allocation8 + $0x1e8] sm:$0xff]  ;;  %v463_v55 = vld [vmem:[#allocation8 + $0x1f8] sm:$0xff] }
  0x63   :  { %2002 = vmatmul.mubr.msk.f32.gmra.mrb[8].mxu1 %vm117_vm0, %v83_v14  ;;  %2110 = vmatpush1.bf16.msra.mxu0 %v3134_v15  ;;  %v85_v51 = vld [vmem:[#allocation3 + $0x30] sm:$0xff]  ;;  %v3170_v56 = vpack.c.bf16 %v454_v45, %v450_v44  ;;  %v456_v57 = vld [vmem:[#allocation8 + $0x1c0] sm:$0xff]  ;;  %v3174_v60 = vpack.c.bf16 %v461_v49, %v457_v48  ;;  %v3178_v1 = vpack.c.bf16 %v463_v55, %v459_v53  ;;  %v86_v3 = vld [vmem:[#allocation3 + $0x38] sm:$0xff] }
  0x64   :  { %2142 = vmatpush1.bf16.msra.mxu1 %v3138_v19  ;;  %236 = vmatprep.mubr.f32.mxu0 %v2961_v0  ;;  %v460_v59 = vld [vmem:[#allocation8 + $0x1e0] sm:$0xff]  ;;  %v458_v62 = vld [vmem:[#allocation8 + $0x1d0] sm:$0xff] }
  0x65   :  { %349 = vmatprep.mubr.f32.mxu1 %v2961_v0  ;;  %2112 = vmatprep.subr.bf16.mxu0 %v3142_v24  ;;  %v462_v63 = vld [vmem:[#allocation8 + $0x1f0] sm:$0xff]  ;;  %v3182_v4 = vpack.c.bf16 %v460_v59, %v456_v57  ;;  %v95_v12 = vld [vmem:[%s3529_s3] sm:$0xf] }
  0x66   :  { %1995 = vmatmul.mubr.msk.f32.gmra.mrb[10].mxu0 %vm117_vm0, %v84_v32  ;;  %2144 = vmatprep.subr.bf16.mxu1 %v3146_v28  ;;  %v3186_v6 = vpack.c.bf16 %v462_v63, %v458_v62  ;;  %v3239_v14 = vrot.slane %v95_v12, %v99_v10  ;;  %v3241_v16 = vrot.slane %v95_v12, %v103_v13 }
  0x67   :  { %2003 = vmatmul.mubr.msk.f32.gmra.mrb[10].mxu1 %vm117_vm0, %v84_v32  ;;  %2114 = vmatpush1.bf16.msra.mxu0 %v3150_v33  ;;  %v3245_v37 = vrot.slane %v95_v12, %v111_v20  ;;  %v3248_v44 = vrot.slane %v95_v12, %v107_v40 }
  0x68   :  { %2146 = vmatpush1.bf16.msra.mxu1 %v3154_v39  ;;  %242 = vmatprep.mubr.f32.mxu0 %v2961_v0 }
  0x69   :  { %355 = vmatprep.mubr.f32.mxu1 %v2961_v0  ;;  %2116 = vmatprep.subr.bf16.mxu0 %v3158_v43 }
  0x6a   :  { %1996 = vmatmul.mubr.msk.f32.gmra.mrb[12].mxu0 %vm117_vm0, %v85_v51  ;;  %2148 = vmatprep.subr.bf16.mxu1 %v3162_v46 }
  0x6b   :  { %2004 = vmatmul.mubr.msk.f32.gmra.mrb[12].mxu1 %vm117_vm0, %v85_v51  ;;  %2118 = vmatpush1.bf16.msra.mxu0 %v3166_v52 }
  0x6c   :  { %2150 = vmatpush1.bf16.msra.mxu1 %v3170_v56  ;;  %248 = vmatprep.mubr.f32.mxu0 %v2961_v0 }
  0x6d   :  { %361 = vmatprep.mubr.f32.mxu1 %v2961_v0  ;;  %2120 = vmatprep.subr.bf16.mxu0 %v3174_v60 }
  0x6e   :  { %1997 = vmatmul.mubr.msk.f32.gmra.mrb[14].mxu0 %vm117_vm0, %v86_v3  ;;  %2152 = vmatprep.subr.bf16.mxu1 %v3178_v1 }
  0x6f   :  { %2005 = vmatmul.mubr.msk.f32.gmra.mrb[14].mxu1 %vm117_vm0, %v86_v3  ;;  %2122 = vmatpush1.bf16.msra.mxu0 %v3182_v4 }
  0x70   :  { %2154 = vmatpush1.bf16.msra.mxu1 %v3186_v6  ;;  %532 = vmatprep.mubr.f32.mxu0 %v2961_v0 }
  0x71   :  { %603 = vmatprep.mubr.f32.mxu1 %v2961_v0  ;;  %2156 = vmatprep.subr.bf16.mxu0 %v3069_v17 }
  0x72   :  { %533 = vmatmul.mubr.f32.vlgmr.msra.gmra.mrb[0].mxu0 %v2961_v0  ;;  %2188 = vmatprep.subr.bf16.mxu1 %v3071_v21 }
  0x73   :  { %604 = vmatmul.mubr.f32.vlgmr.msra.gmra.mrb[0].mxu1 %v2961_v0  ;;  %2158 = vmatpush1.bf16.msra.mxu0 %v3073_v22 }
  0x74   :  { %2190 = vmatpush1.bf16.msra.mxu1 %v3076_v25  ;;  %2160 = vmatprep.subr.bf16.mxu0 %v3080_v29 }
  0x75   :  { %2192 = vmatprep.subr.bf16.mxu1 %v3084_v34  ;;  %707 = vmatprep.mubr.f32.mxu0 %v2961_v0 }
  0x76   :  { %778 = vmatprep.mubr.f32.mxu1 %v2961_v0 }
  0x77   :  { %2162 = vmatpush1.bf16.msra.mxu0 %v3086_v35 }
  0x78   :  { %2194 = vmatpush1.bf16.msra.mxu1 %v3090_v38  ;;  %2164 = vmatprep.subr.bf16.mxu0 %v3094_v42 }
  0x79   :  { %2196 = vmatprep.subr.bf16.mxu1 %v3098_v47 }
  0x7b   :  { %2166 = vmatpush1.bf16.msra.mxu0 %v3102_v50 }
  0x7c   :  { %2198 = vmatpush1.bf16.msra.mxu1 %v3106_v54  ;;  %2168 = vmatprep.subr.bf16.mxu0 %v3110_v58 }
  0x7d   :  { %2200 = vmatprep.subr.bf16.mxu1 %v3114_v61 }
  0x7f   :  { %2170 = vmatpush1.bf16.msra.mxu0 %v3118_v2 }
  0x80   :  { %2202 = vmatpush1.bf16.msra.mxu1 %v3122_v5  ;;  %2172 = vmatprep.subr.bf16.mxu0 %v3126_v8 }
  0x81   :  { %2204 = vmatprep.subr.bf16.mxu1 %v3130_v11 }
  0x83   :  { %2174 = vmatpush1.bf16.msra.mxu0 %v3134_v15 }
  0x84   :  { %2206 = vmatpush1.bf16.msra.mxu1 %v3138_v19  ;;  %2176 = vmatprep.subr.bf16.mxu0 %v3142_v24 }
  0x85   :  { %2208 = vmatprep.subr.bf16.mxu1 %v3146_v28 }
  0x87   :  { %2178 = vmatpush1.bf16.msra.mxu0 %v3150_v33 }
  0x88   :  { %2210 = vmatpush1.bf16.msra.mxu1 %v3154_v39  ;;  %2180 = vmatprep.subr.bf16.mxu0 %v3158_v43 }
  0x89   :  { %2212 = vmatprep.subr.bf16.mxu1 %v3162_v46 }
  0x8b   :  { %2182 = vmatpush1.bf16.msra.mxu0 %v3166_v52 }
  0x8c   :  { %2214 = vmatpush1.bf16.msra.mxu1 %v3170_v56  ;;  %2184 = vmatprep.subr.bf16.mxu0 %v3174_v60 }
  0x8d   :  { %2216 = vmatprep.subr.bf16.mxu1 %v3178_v1 }
  0x8f   :  { %2186 = vmatpush1.bf16.msra.mxu0 %v3182_v4 }
  0x90   :  { %2218 = vmatpush1.bf16.msra.mxu1 %v3186_v6  ;;  %2220 = vmatprep.subr.bf16.mxu0 %v3069_v17 }
  0x91   :  { %2252 = vmatprep.subr.bf16.mxu1 %v3071_v21 }
 0x145   :  { %v534_v18 = vpop.f32.mrb[0].mxu0 }
 0x146   :  { %v2627_v23 = vadd.f32 %v534_v18, %v3239_v14  ;;  %v605_v26 = vpop.f32.mrb[0].mxu1  ;;  %v536_v27 = vpop.f32.mrb[1].mxu0 }
 0x147   :  { %v2628_v30 = vadd.f32 %v536_v27, %v3241_v16  ;;  %v607_v31 = vpop.f32.mrb[1].mxu1  ;;  %v2643_v48 = vadd.f32 %v605_v26, %v3248_v44 }
 0x148   :  { %v2006_v32 = vmul.f32 -1.442695, %v2627_v23  ;;  %v2644_v41 = vadd.f32 %v607_v31, %v3245_v37 }
 0x149   :  { %v2007_v36 = vmul.f32 -1.442695, %v2628_v30 }
 0x14a   :  { %2703 = vpow2.f32 %v2006_v32  ;;  %v2008_v45 = vmul.f32 -1.442695, %v2644_v41 }
 0x14b   :  { %2705 = vpow2.f32 %v2007_v36 }
 0x14c   :  { %2707 = vpow2.f32 %v2008_v45 }
 0x14d   :  { %2709 = vtanh.f32 %v2643_v48 }
 0x154   :  { %v2704_v49 = vpop.eup %2703 }
 0x155   :  { %v2706_v51 = vpop.eup %2705  ;;  %v617_v53 = vadd.f32 1.0, %v2704_v49 }
 0x156   :  { %v623_v55 = vadd.f32 1.0, %v2706_v51  ;;  %v2708_v57 = vpop.eup %2707 }
 0x157   :  { %2711 = vrcp.f32 %v617_v53  ;;  %v2710_v59 = vpop.eup %2709  ;;  %v630_v9 = vadd.f32 1.0, %v2708_v57 }
 0x158   :  { %2713 = vrcp.f32 %v623_v55 }
 0x159   :  { %2715 = vrcp.f32 %v630_v9 }
 0x161   :  { %v2712_v62 = vpop.eup %2711 }
 0x162   :  { %v2714_v63 = vpop.eup %2713  ;;  %v634_v3 = vmul.f32 %v2712_v62, %v2710_v59 }
 0x163   :  { %v633_v10 = vmul.f32 0.0, %v2714_v63  ;;  %v2716_v13 = vpop.eup %2715 }
 0x165   :  { %v3251_v12 = vadd.f32 %v634_v3, %v633_v10 }
 0x167   :  { %2717 = vtanh.f32 %v3251_v12 }
 0x171   :  { %v2718_v18 = vpop.eup %2717 }
 0x172   :  { %v637_v20 = vmul.f32 %v2718_v18, %v2716_v13 }
 0x174   :  { %708 = vmatmul.mubr.f32.vlgmr.msra.gmra.mrb[2].mxu0 %v637_v20  ;;  %779 = vmatmul.mubr.f32.vlgmr.msra.gmra.mrb[2].mxu1 %v637_v20 }
 0x175   :  { %2222 = vmatpush1.bf16.msra.mxu0 %v3073_v22  ;;  %2254 = vmatpush1.bf16.msra.mxu1 %v3076_v25 }
 0x176   :  { %2224 = vmatprep.subr.bf16.mxu0 %v3080_v29  ;;  %2256 = vmatprep.subr.bf16.mxu1 %v3084_v34 }
 0x177   :  { %882 = vmatprep.mubr.f32.mxu0 %v2961_v0  ;;  %953 = vmatprep.mubr.f32.mxu1 %v2961_v0 }
 0x179   :  { %2226 = vmatpush1.bf16.msra.mxu0 %v3086_v35  ;;  %2258 = vmatpush1.bf16.msra.mxu1 %v3090_v38 }
 0x17a   :  { %2228 = vmatprep.subr.bf16.mxu0 %v3094_v42  ;;  %2260 = vmatprep.subr.bf16.mxu1 %v3098_v47 }
 0x17d   :  { %2230 = vmatpush1.bf16.msra.mxu0 %v3102_v50  ;;  %2262 = vmatpush1.bf16.msra.mxu1 %v3106_v54 }
 0x17e   :  { %2232 = vmatprep.subr.bf16.mxu0 %v3110_v58  ;;  %2264 = vmatprep.subr.bf16.mxu1 %v3114_v61 }
 0x181   :  { %2234 = vmatpush1.bf16.msra.mxu0 %v3118_v2  ;;  %2266 = vmatpush1.bf16.msra.mxu1 %v3122_v5 }
 0x182   :  { %2236 = vmatprep.subr.bf16.mxu0 %v3126_v8  ;;  %2268 = vmatprep.subr.bf16.mxu1 %v3130_v11 }
 0x185   :  { %2238 = vmatpush1.bf16.msra.mxu0 %v3134_v15  ;;  %2270 = vmatpush1.bf16.msra.mxu1 %v3138_v19 }
 0x186   :  { %2240 = vmatprep.subr.bf16.mxu0 %v3142_v24  ;;  %2272 = vmatprep.subr.bf16.mxu1 %v3146_v28 }
 0x189   :  { %2242 = vmatpush1.bf16.msra.mxu0 %v3150_v33  ;;  %2274 = vmatpush1.bf16.msra.mxu1 %v3154_v39 }
 0x18a   :  { %2244 = vmatprep.subr.bf16.mxu0 %v3158_v43  ;;  %2276 = vmatprep.subr.bf16.mxu1 %v3162_v46 }
 0x18d   :  { %2246 = vmatpush1.bf16.msra.mxu0 %v3166_v52  ;;  %2278 = vmatpush1.bf16.msra.mxu1 %v3170_v56 }
 0x18e   :  { %2248 = vmatprep.subr.bf16.mxu0 %v3174_v60  ;;  %2280 = vmatprep.subr.bf16.mxu1 %v3178_v1 }
 0x191   :  { %2250 = vmatpush1.bf16.msra.mxu0 %v3182_v4  ;;  %2282 = vmatpush1.bf16.msra.mxu1 %v3186_v6 }
 0x192   :  { %2284 = vmatprep.subr.bf16.mxu0 %v3069_v17  ;;  %2316 = vmatprep.subr.bf16.mxu1 %v3071_v21 }
 0x247   :  { %v709_v23 = vpop.f32.mrb[2].mxu0  ;;  %v780_v26 = vpop.f32.mrb[2].mxu1 }
 0x248   :  { %v2629_v27 = vadd.f32 %v709_v23, %v3239_v14  ;;  %v711_v30 = vpop.f32.mrb[3].mxu0  ;;  %v782_v31 = vpop.f32.mrb[3].mxu1  ;;  %v2645_v48 = vadd.f32 %v780_v26, %v3248_v44 }
 0x249   :  { %v2630_v32 = vadd.f32 %v711_v30, %v3241_v16  ;;  %v2646_v41 = vadd.f32 %v782_v31, %v3245_v37 }
 0x24a   :  { %v2009_v36 = vmul.f32 -1.442695, %v2629_v27 }
 0x24b   :  { %v2010_v40 = vmul.f32 -1.442695, %v2630_v32  ;;  %v2011_v45 = vmul.f32 -1.442695, %v2646_v41 }
 0x24c   :  { %2719 = vpow2.f32 %v2009_v36 }
 0x24d   :  { %2721 = vpow2.f32 %v2010_v40 }
 0x24e   :  { %2723 = vpow2.f32 %v2011_v45 }
 0x24f   :  { %2725 = vtanh.f32 %v2645_v48 }
 0x256   :  { %v2720_v49 = vpop.eup %2719 }
 0x257   :  { %v2722_v51 = vpop.eup %2721  ;;  %v792_v53 = vadd.f32 1.0, %v2720_v49 }
 0x258   :  { %v798_v55 = vadd.f32 1.0, %v2722_v51  ;;  %v2724_v57 = vpop.eup %2723 }
 0x259   :  { %2727 = vrcp.f32 %v792_v53  ;;  %v2726_v59 = vpop.eup %2725  ;;  %v805_v9 = vadd.f32 1.0, %v2724_v57 }
 0x25a   :  { %2729 = vrcp.f32 %v798_v55 }
 0x25b   :  { %2731 = vrcp.f32 %v805_v9 }
 0x263   :  { %v2728_v62 = vpop.eup %2727 }
 0x264   :  { %v2730_v63 = vpop.eup %2729  ;;  %v809_v3 = vmul.f32 %v2728_v62, %v2726_v59 }
 0x265   :  { %v808_v10 = vmul.f32 %v2730_v63, %v3251_v12  ;;  %v2732_v18 = vpop.eup %2731 }
 0x267   :  { %v3293_v13 = vadd.f32 %v809_v3, %v808_v10 }
 0x269   :  { %2733 = vtanh.f32 %v3293_v13 }
 0x273   :  { %v2734_v20 = vpop.eup %2733 }
 0x274   :  { %v812_v23 = vmul.f32 %v2734_v20, %v2732_v18 }
 0x276   :  { %883 = vmatmul.mubr.f32.vlgmr.msra.gmra.mrb[4].mxu0 %v812_v23  ;;  %954 = vmatmul.mubr.f32.vlgmr.msra.gmra.mrb[4].mxu1 %v812_v23 }
 0x277   :  { %2286 = vmatpush1.bf16.msra.mxu0 %v3073_v22  ;;  %2318 = vmatpush1.bf16.msra.mxu1 %v3076_v25 }
 0x278   :  { %2288 = vmatprep.subr.bf16.mxu0 %v3080_v29  ;;  %2320 = vmatprep.subr.bf16.mxu1 %v3084_v34 }
 0x279   :  { %1057 = vmatprep.mubr.f32.mxu0 %v2961_v0  ;;  %1128 = vmatprep.mubr.f32.mxu1 %v2961_v0 }
 0x27b   :  { %2290 = vmatpush1.bf16.msra.mxu0 %v3086_v35  ;;  %2322 = vmatpush1.bf16.msra.mxu1 %v3090_v38 }
 0x27c   :  { %2292 = vmatprep.subr.bf16.mxu0 %v3094_v42  ;;  %2324 = vmatprep.subr.bf16.mxu1 %v3098_v47 }
 0x27f   :  { %2294 = vmatpush1.bf16.msra.mxu0 %v3102_v50  ;;  %2326 = vmatpush1.bf16.msra.mxu1 %v3106_v54 }
 0x280   :  { %2296 = vmatprep.subr.bf16.mxu0 %v3110_v58  ;;  %2328 = vmatprep.subr.bf16.mxu1 %v3114_v61 }
 0x283   :  { %2298 = vmatpush1.bf16.msra.mxu0 %v3118_v2  ;;  %2330 = vmatpush1.bf16.msra.mxu1 %v3122_v5 }
 0x284   :  { %2300 = vmatprep.subr.bf16.mxu0 %v3126_v8  ;;  %2332 = vmatprep.subr.bf16.mxu1 %v3130_v11 }
 0x287   :  { %2302 = vmatpush1.bf16.msra.mxu0 %v3134_v15  ;;  %2334 = vmatpush1.bf16.msra.mxu1 %v3138_v19 }
 0x288   :  { %2304 = vmatprep.subr.bf16.mxu0 %v3142_v24  ;;  %2336 = vmatprep.subr.bf16.mxu1 %v3146_v28 }
 0x28b   :  { %2306 = vmatpush1.bf16.msra.mxu0 %v3150_v33  ;;  %2338 = vmatpush1.bf16.msra.mxu1 %v3154_v39 }
 0x28c   :  { %2308 = vmatprep.subr.bf16.mxu0 %v3158_v43  ;;  %2340 = vmatprep.subr.bf16.mxu1 %v3162_v46 }
 0x28f   :  { %2310 = vmatpush1.bf16.msra.mxu0 %v3166_v52  ;;  %2342 = vmatpush1.bf16.msra.mxu1 %v3170_v56 }
 0x290   :  { %2312 = vmatprep.subr.bf16.mxu0 %v3174_v60  ;;  %2344 = vmatprep.subr.bf16.mxu1 %v3178_v1 }
 0x293   :  { %2314 = vmatpush1.bf16.msra.mxu0 %v3182_v4  ;;  %2346 = vmatpush1.bf16.msra.mxu1 %v3186_v6 }
 0x294   :  { %2348 = vmatprep.subr.bf16.mxu0 %v3069_v17  ;;  %2380 = vmatprep.subr.bf16.mxu1 %v3071_v21 }
 0x349   :  { %v884_v12 = vpop.f32.mrb[4].mxu0  ;;  %v955_v26 = vpop.f32.mrb[4].mxu1 }
 0x34a   :  { %v2631_v27 = vadd.f32 %v884_v12, %v3239_v14  ;;  %v886_v30 = vpop.f32.mrb[5].mxu0  ;;  %v957_v31 = vpop.f32.mrb[5].mxu1  ;;  %v2647_v48 = vadd.f32 %v955_v26, %v3248_v44 }
 0x34b   :  { %v2632_v32 = vadd.f32 %v886_v30, %v3241_v16  ;;  %v2648_v41 = vadd.f32 %v957_v31, %v3245_v37 }
 0x34c   :  { %v2012_v36 = vmul.f32 -1.442695, %v2631_v27 }
 0x34d   :  { %v2013_v40 = vmul.f32 -1.442695, %v2632_v32  ;;  %v2014_v45 = vmul.f32 -1.442695, %v2648_v41 }
 0x34e   :  { %2735 = vpow2.f32 %v2012_v36 }
 0x34f   :  { %2737 = vpow2.f32 %v2013_v40 }
 0x350   :  { %2739 = vpow2.f32 %v2014_v45 }
 0x351   :  { %2741 = vtanh.f32 %v2647_v48 }
 0x358   :  { %v2736_v49 = vpop.eup %2735 }
 0x359   :  { %v2738_v51 = vpop.eup %2737  ;;  %v967_v53 = vadd.f32 1.0, %v2736_v49 }
 0x35a   :  { %v973_v55 = vadd.f32 1.0, %v2738_v51  ;;  %v2740_v57 = vpop.eup %2739 }
 0x35b   :  { %2743 = vrcp.f32 %v967_v53  ;;  %v2742_v59 = vpop.eup %2741  ;;  %v980_v9 = vadd.f32 1.0, %v2740_v57 }
 0x35c   :  { %2745 = vrcp.f32 %v973_v55 }
 0x35d   :  { %2747 = vrcp.f32 %v980_v9 }
 0x365   :  { %v2744_v62 = vpop.eup %2743 }
 0x366   :  { %v2746_v63 = vpop.eup %2745  ;;  %v984_v3 = vmul.f32 %v2744_v62, %v2742_v59 }
 0x367   :  { %v983_v10 = vmul.f32 %v2746_v63, %v3293_v13  ;;  %v2748_v20 = vpop.eup %2747 }
 0x369   :  { %v3335_v18 = vadd.f32 %v984_v3, %v983_v10 }
 0x36b   :  { %2749 = vtanh.f32 %v3335_v18 }
 0x375   :  { %v2750_v23 = vpop.eup %2749 }
 0x376   :  { %v987_v12 = vmul.f32 %v2750_v23, %v2748_v20 }
 0x378   :  { %1058 = vmatmul.mubr.f32.vlgmr.msra.gmra.mrb[6].mxu0 %v987_v12  ;;  %1129 = vmatmul.mubr.f32.vlgmr.msra.gmra.mrb[6].mxu1 %v987_v12 }
 0x379   :  { %2350 = vmatpush1.bf16.msra.mxu0 %v3073_v22  ;;  %2382 = vmatpush1.bf16.msra.mxu1 %v3076_v25 }
 0x37a   :  { %2352 = vmatprep.subr.bf16.mxu0 %v3080_v29  ;;  %2384 = vmatprep.subr.bf16.mxu1 %v3084_v34 }
 0x37b   :  { %1232 = vmatprep.mubr.f32.mxu0 %v2961_v0  ;;  %1303 = vmatprep.mubr.f32.mxu1 %v2961_v0 }
 0x37d   :  { %2354 = vmatpush1.bf16.msra.mxu0 %v3086_v35  ;;  %2386 = vmatpush1.bf16.msra.mxu1 %v3090_v38 }
 0x37e   :  { %2356 = vmatprep.subr.bf16.mxu0 %v3094_v42  ;;  %2388 = vmatprep.subr.bf16.mxu1 %v3098_v47 }
 0x381   :  { %2358 = vmatpush1.bf16.msra.mxu0 %v3102_v50  ;;  %2390 = vmatpush1.bf16.msra.mxu1 %v3106_v54 }
 0x382   :  { %2360 = vmatprep.subr.bf16.mxu0 %v3110_v58  ;;  %2392 = vmatprep.subr.bf16.mxu1 %v3114_v61 }
 0x385   :  { %2362 = vmatpush1.bf16.msra.mxu0 %v3118_v2  ;;  %2394 = vmatpush1.bf16.msra.mxu1 %v3122_v5 }
 0x386   :  { %2364 = vmatprep.subr.bf16.mxu0 %v3126_v8  ;;  %2396 = vmatprep.subr.bf16.mxu1 %v3130_v11 }
 0x389   :  { %2366 = vmatpush1.bf16.msra.mxu0 %v3134_v15  ;;  %2398 = vmatpush1.bf16.msra.mxu1 %v3138_v19 }
 0x38a   :  { %2368 = vmatprep.subr.bf16.mxu0 %v3142_v24  ;;  %2400 = vmatprep.subr.bf16.mxu1 %v3146_v28 }
 0x38d   :  { %2370 = vmatpush1.bf16.msra.mxu0 %v3150_v33  ;;  %2402 = vmatpush1.bf16.msra.mxu1 %v3154_v39 }
 0x38e   :  { %2372 = vmatprep.subr.bf16.mxu0 %v3158_v43  ;;  %2404 = vmatprep.subr.bf16.mxu1 %v3162_v46 }
 0x391   :  { %2374 = vmatpush1.bf16.msra.mxu0 %v3166_v52  ;;  %2406 = vmatpush1.bf16.msra.mxu1 %v3170_v56 }
 0x392   :  { %2376 = vmatprep.subr.bf16.mxu0 %v3174_v60  ;;  %2408 = vmatprep.subr.bf16.mxu1 %v3178_v1 }
 0x395   :  { %2378 = vmatpush1.bf16.msra.mxu0 %v3182_v4  ;;  %2410 = vmatpush1.bf16.msra.mxu1 %v3186_v6 }
 0x396   :  { %2412 = vmatprep.subr.bf16.mxu0 %v3069_v17  ;;  %2444 = vmatprep.subr.bf16.mxu1 %v3071_v21 }
 0x44b   :  { %v1059_v13 = vpop.f32.mrb[6].mxu0  ;;  %v1130_v26 = vpop.f32.mrb[6].mxu1 }
 0x44c   :  { %v2633_v27 = vadd.f32 %v1059_v13, %v3239_v14  ;;  %v1061_v30 = vpop.f32.mrb[7].mxu0  ;;  %v1132_v31 = vpop.f32.mrb[7].mxu1  ;;  %v2649_v48 = vadd.f32 %v1130_v26, %v3248_v44 }
 0x44d   :  { %v2634_v32 = vadd.f32 %v1061_v30, %v3241_v16  ;;  %v2650_v41 = vadd.f32 %v1132_v31, %v3245_v37 }
 0x44e   :  { %v2015_v36 = vmul.f32 -1.442695, %v2633_v27 }
 0x44f   :  { %v2016_v40 = vmul.f32 -1.442695, %v2634_v32  ;;  %v2017_v45 = vmul.f32 -1.442695, %v2650_v41 }
 0x450   :  { %2751 = vpow2.f32 %v2015_v36 }
 0x451   :  { %2753 = vpow2.f32 %v2016_v40 }
 0x452   :  { %2755 = vpow2.f32 %v2017_v45 }
 0x453   :  { %2757 = vtanh.f32 %v2649_v48 }
 0x45a   :  { %v2752_v49 = vpop.eup %2751 }
 0x45b   :  { %v2754_v51 = vpop.eup %2753  ;;  %v1142_v53 = vadd.f32 1.0, %v2752_v49 }
 0x45c   :  { %v1148_v55 = vadd.f32 1.0, %v2754_v51  ;;  %v2756_v57 = vpop.eup %2755 }
 0x45d   :  { %2759 = vrcp.f32 %v1142_v53  ;;  %v2758_v59 = vpop.eup %2757  ;;  %v1155_v9 = vadd.f32 1.0, %v2756_v57 }
 0x45e   :  { %2761 = vrcp.f32 %v1148_v55 }
 0x45f   :  { %2763 = vrcp.f32 %v1155_v9 }
 0x467   :  { %v2760_v62 = vpop.eup %2759 }
 0x468   :  { %v2762_v63 = vpop.eup %2761  ;;  %v1159_v3 = vmul.f32 %v2760_v62, %v2758_v59 }
 0x469   :  { %v1158_v10 = vmul.f32 %v2762_v63, %v3335_v18  ;;  %v2764_v23 = vpop.eup %2763 }
 0x46b   :  { %v3377_v20 = vadd.f32 %v1159_v3, %v1158_v10 }
 0x46d   :  { %2765 = vtanh.f32 %v3377_v20 }
 0x477   :  { %v2766_v12 = vpop.eup %2765 }
 0x478   :  { %v1162_v13 = vmul.f32 %v2766_v12, %v2764_v23 }
 0x47a   :  { %1233 = vmatmul.mubr.f32.vlgmr.msra.gmra.mrb[8].mxu0 %v1162_v13  ;;  %1304 = vmatmul.mubr.f32.vlgmr.msra.gmra.mrb[8].mxu1 %v1162_v13 }
 0x47b   :  { %2414 = vmatpush1.bf16.msra.mxu0 %v3073_v22  ;;  %2446 = vmatpush1.bf16.msra.mxu1 %v3076_v25 }
 0x47c   :  { %2416 = vmatprep.subr.bf16.mxu0 %v3080_v29  ;;  %2448 = vmatprep.subr.bf16.mxu1 %v3084_v34 }
 0x47d   :  { %1407 = vmatprep.mubr.f32.mxu0 %v2961_v0  ;;  %1478 = vmatprep.mubr.f32.mxu1 %v2961_v0 }
 0x47f   :  { %2418 = vmatpush1.bf16.msra.mxu0 %v3086_v35  ;;  %2450 = vmatpush1.bf16.msra.mxu1 %v3090_v38 }
 0x480   :  { %2420 = vmatprep.subr.bf16.mxu0 %v3094_v42  ;;  %2452 = vmatprep.subr.bf16.mxu1 %v3098_v47 }
 0x483   :  { %2422 = vmatpush1.bf16.msra.mxu0 %v3102_v50  ;;  %2454 = vmatpush1.bf16.msra.mxu1 %v3106_v54 }
 0x484   :  { %2424 = vmatprep.subr.bf16.mxu0 %v3110_v58  ;;  %2456 = vmatprep.subr.bf16.mxu1 %v3114_v61 }
 0x487   :  { %2426 = vmatpush1.bf16.msra.mxu0 %v3118_v2  ;;  %2458 = vmatpush1.bf16.msra.mxu1 %v3122_v5 }
 0x488   :  { %2428 = vmatprep.subr.bf16.mxu0 %v3126_v8  ;;  %2460 = vmatprep.subr.bf16.mxu1 %v3130_v11 }
 0x48b   :  { %2430 = vmatpush1.bf16.msra.mxu0 %v3134_v15  ;;  %2462 = vmatpush1.bf16.msra.mxu1 %v3138_v19 }
 0x48c   :  { %2432 = vmatprep.subr.bf16.mxu0 %v3142_v24  ;;  %2464 = vmatprep.subr.bf16.mxu1 %v3146_v28 }
 0x48f   :  { %2434 = vmatpush1.bf16.msra.mxu0 %v3150_v33  ;;  %2466 = vmatpush1.bf16.msra.mxu1 %v3154_v39 }
 0x490   :  { %2436 = vmatprep.subr.bf16.mxu0 %v3158_v43  ;;  %2468 = vmatprep.subr.bf16.mxu1 %v3162_v46 }
 0x493   :  { %2438 = vmatpush1.bf16.msra.mxu0 %v3166_v52  ;;  %2470 = vmatpush1.bf16.msra.mxu1 %v3170_v56 }
 0x494   :  { %2440 = vmatprep.subr.bf16.mxu0 %v3174_v60  ;;  %2472 = vmatprep.subr.bf16.mxu1 %v3178_v1 }
 0x497   :  { %2442 = vmatpush1.bf16.msra.mxu0 %v3182_v4  ;;  %2474 = vmatpush1.bf16.msra.mxu1 %v3186_v6 }
 0x498   :  { %2476 = vmatprep.subr.bf16.mxu0 %v3069_v17  ;;  %2508 = vmatprep.subr.bf16.mxu1 %v3071_v21 }
 0x54d   :  { %v1234_v18 = vpop.f32.mrb[8].mxu0  ;;  %v1305_v26 = vpop.f32.mrb[8].mxu1 }
 0x54e   :  { %v2635_v27 = vadd.f32 %v1234_v18, %v3239_v14  ;;  %v1236_v30 = vpop.f32.mrb[9].mxu0  ;;  %v1307_v31 = vpop.f32.mrb[9].mxu1  ;;  %v2651_v48 = vadd.f32 %v1305_v26, %v3248_v44 }
 0x54f   :  { %v2636_v32 = vadd.f32 %v1236_v30, %v3241_v16  ;;  %v2652_v41 = vadd.f32 %v1307_v31, %v3245_v37 }
 0x550   :  { %v2018_v36 = vmul.f32 -1.442695, %v2635_v27 }
 0x551   :  { %v2019_v40 = vmul.f32 -1.442695, %v2636_v32  ;;  %v2020_v45 = vmul.f32 -1.442695, %v2652_v41 }
 0x552   :  { %2767 = vpow2.f32 %v2018_v36 }
 0x553   :  { %2769 = vpow2.f32 %v2019_v40 }
 0x554   :  { %2771 = vpow2.f32 %v2020_v45 }
 0x555   :  { %2773 = vtanh.f32 %v2651_v48 }
 0x55c   :  { %v2768_v49 = vpop.eup %2767 }
 0x55d   :  { %v2770_v51 = vpop.eup %2769  ;;  %v1317_v53 = vadd.f32 1.0, %v2768_v49 }
 0x55e   :  { %v1323_v55 = vadd.f32 1.0, %v2770_v51  ;;  %v2772_v57 = vpop.eup %2771 }
 0x55f   :  { %2775 = vrcp.f32 %v1317_v53  ;;  %v2774_v59 = vpop.eup %2773  ;;  %v1330_v9 = vadd.f32 1.0, %v2772_v57 }
 0x560   :  { %2777 = vrcp.f32 %v1323_v55 }
 0x561   :  { %2779 = vrcp.f32 %v1330_v9 }
 0x569   :  { %v2776_v62 = vpop.eup %2775 }
 0x56a   :  { %v2778_v63 = vpop.eup %2777  ;;  %v1334_v3 = vmul.f32 %v2776_v62, %v2774_v59 }
 0x56b   :  { %v1333_v10 = vmul.f32 %v2778_v63, %v3377_v20  ;;  %v2780_v12 = vpop.eup %2779 }
 0x56d   :  { %v3419_v23 = vadd.f32 %v1334_v3, %v1333_v10 }
 0x56f   :  { %2781 = vtanh.f32 %v3419_v23 }
 0x579   :  { %v2782_v13 = vpop.eup %2781 }
 0x57a   :  { %v1337_v18 = vmul.f32 %v2782_v13, %v2780_v12 }
 0x57c   :  { %1408 = vmatmul.mubr.f32.vlgmr.msra.gmra.mrb[10].mxu0 %v1337_v18  ;;  %1479 = vmatmul.mubr.f32.vlgmr.msra.gmra.mrb[10].mxu1 %v1337_v18  ;;  %v1866_v18 = vld [vmem:[#allocation9 + $0x18] sm:$0xff] }
 0x57d   :  { %2478 = vmatpush1.bf16.msra.mxu0 %v3073_v22  ;;  %2510 = vmatpush1.bf16.msra.mxu1 %v3076_v25 }
 0x57e   :  { %2480 = vmatprep.subr.bf16.mxu0 %v3080_v29  ;;  %2512 = vmatprep.subr.bf16.mxu1 %v3084_v34 }
 0x57f   :  { %1582 = vmatprep.mubr.f32.mxu0 %v2961_v0  ;;  %1653 = vmatprep.mubr.f32.mxu1 %v2961_v0 }
 0x581   :  { %2482 = vmatpush1.bf16.msra.mxu0 %v3086_v35  ;;  %2514 = vmatpush1.bf16.msra.mxu1 %v3090_v38 }
 0x582   :  { %2484 = vmatprep.subr.bf16.mxu0 %v3094_v42  ;;  %2516 = vmatprep.subr.bf16.mxu1 %v3098_v47 }
 0x585   :  { %2486 = vmatpush1.bf16.msra.mxu0 %v3102_v50  ;;  %2518 = vmatpush1.bf16.msra.mxu1 %v3106_v54 }
 0x586   :  { %2488 = vmatprep.subr.bf16.mxu0 %v3110_v58  ;;  %2520 = vmatprep.subr.bf16.mxu1 %v3114_v61 }
 0x589   :  { %2490 = vmatpush1.bf16.msra.mxu0 %v3118_v2  ;;  %2522 = vmatpush1.bf16.msra.mxu1 %v3122_v5 }
 0x58a   :  { %2492 = vmatprep.subr.bf16.mxu0 %v3126_v8  ;;  %2524 = vmatprep.subr.bf16.mxu1 %v3130_v11 }
 0x58d   :  { %2494 = vmatpush1.bf16.msra.mxu0 %v3134_v15  ;;  %2526 = vmatpush1.bf16.msra.mxu1 %v3138_v19 }
 0x58e   :  { %2496 = vmatprep.subr.bf16.mxu0 %v3142_v24  ;;  %2528 = vmatprep.subr.bf16.mxu1 %v3146_v28 }
 0x591   :  { %2498 = vmatpush1.bf16.msra.mxu0 %v3150_v33  ;;  %2530 = vmatpush1.bf16.msra.mxu1 %v3154_v39 }
 0x592   :  { %2500 = vmatprep.subr.bf16.mxu0 %v3158_v43  ;;  %2532 = vmatprep.subr.bf16.mxu1 %v3162_v46 }
 0x595   :  { %2502 = vmatpush1.bf16.msra.mxu0 %v3166_v52  ;;  %2534 = vmatpush1.bf16.msra.mxu1 %v3170_v56 }
 0x596   :  { %2504 = vmatprep.subr.bf16.mxu0 %v3174_v60  ;;  %2536 = vmatprep.subr.bf16.mxu1 %v3178_v1 }
 0x599   :  { %2506 = vmatpush1.bf16.msra.mxu0 %v3182_v4  ;;  %2538 = vmatpush1.bf16.msra.mxu1 %v3186_v6 }
 0x59a   :  { %2540 = vmatprep.subr.bf16.mxu0 %v3069_v17  ;;  %2572 = vmatprep.subr.bf16.mxu1 %v3071_v21 }
 0x64f   :  { %v1409_v20 = vpop.f32.mrb[10].mxu0  ;;  %v1480_v26 = vpop.f32.mrb[10].mxu1 }
 0x650   :  { %v2637_v27 = vadd.f32 %v1409_v20, %v3239_v14  ;;  %v1411_v30 = vpop.f32.mrb[11].mxu0  ;;  %v1482_v31 = vpop.f32.mrb[11].mxu1  ;;  %v2653_v48 = vadd.f32 %v1480_v26, %v3248_v44  ;;  %v1867_v26 = vld [vmem:[#allocation9 + $0x20] sm:$0xff] }
 0x651   :  { %v2638_v32 = vadd.f32 %v1411_v30, %v3241_v16  ;;  %v2654_v41 = vadd.f32 %v1482_v31, %v3245_v37  ;;  %v1869_v31 = vld [vmem:[#allocation9 + $0x30] sm:$0xff] }
 0x652   :  { %v2021_v36 = vmul.f32 -1.442695, %v2637_v27  ;;  %v1868_v27 = vld [vmem:[#allocation9 + $0x28] sm:$0xff] }
 0x653   :  { %v2022_v40 = vmul.f32 -1.442695, %v2638_v32  ;;  %v2023_v45 = vmul.f32 -1.442695, %v2654_v41  ;;  %v2610_v30 = vpack.c.bf16 %v1868_v27, %v1867_v26  ;;  %v1870_v32 = vld [vmem:[#allocation9 + $0x38] sm:$0xff]  ;;  %v1872_v41 = vld [vmem:[#allocation9 + $0x48] sm:$0xff] }
 0x654   :  { %2783 = vpow2.f32 %v2021_v36  ;;  %v2613_v36 = vpack.c.bf16 %v1870_v32, %v1869_v31 }
 0x655   :  { %2785 = vpow2.f32 %v2022_v40  ;;  %v1871_v40 = vld [vmem:[#allocation9 + $0x40] sm:$0xff] }
 0x656   :  { %2787 = vpow2.f32 %v2023_v45  ;;  %v2616_v45 = vpack.c.bf16 %v1872_v41, %v1871_v40 }
 0x657   :  { %2789 = vtanh.f32 %v2653_v48  ;;  %v1873_v48 = vld [vmem:[#allocation9 + $0x50] sm:$0xff] }
 0x65e   :  { %v2784_v17 = vpop.eup %2783 }
 0x65f   :  { %v2786_v49 = vpop.eup %2785  ;;  %v1492_v21 = vadd.f32 1.0, %v2784_v17  ;;  %v1874_v17 = vld [vmem:[#allocation9 + $0x58] sm:$0xff] }
 0x660   :  { %v1498_v51 = vadd.f32 1.0, %v2786_v49  ;;  %v2788_v53 = vpop.eup %2787  ;;  %v1875_v49 = vld [vmem:[#allocation9 + $0x60] sm:$0xff] }
 0x661   :  { %2791 = vrcp.f32 %v1492_v21  ;;  %v2790_v55 = vpop.eup %2789  ;;  %v1505_v63 = vadd.f32 1.0, %v2788_v53  ;;  %v2619_v21 = vpack.c.bf16 %v1874_v17, %v1873_v48 }
 0x662   :  { %2793 = vrcp.f32 %v1498_v51  ;;  %v1876_v51 = vld [vmem:[#allocation9 + $0x68] sm:$0xff] }
 0x663   :  { %2795 = vrcp.f32 %v1505_v63  ;;  %v2622_v53 = vpack.c.bf16 %v1876_v51, %v1875_v49 }
 0x66b   :  { %v2792_v57 = vpop.eup %2791 }
 0x66c   :  { %v2794_v59 = vpop.eup %2793  ;;  %v1509_v62 = vmul.f32 %v2792_v57, %v2790_v55  ;;  %v1877_v55 = vld [vmem:[#allocation9 + $0x70] sm:$0xff]  ;;  %v1878_v57 = vld [vmem:[#allocation9 + $0x78] sm:$0xff] }
 0x66d   :  { %v1508_v3 = vmul.f32 %v2794_v59, %v3419_v23  ;;  %v2796_v10 = vpop.eup %2795  ;;  %v1865_v23 = vld [vmem:[#allocation9 + $0x10] sm:$0xff]  ;;  %v2625_v59 = vpack.c.bf16 %v1878_v57, %v1877_v55 }
 0x66e   :  { %v2607_v20 = vpack.c.bf16 %v1866_v18, %v1865_v23 }
 0x66f   :  { %v3461_v9 = vadd.f32 %v1509_v62, %v1508_v3 }
 0x671   :  { %2797 = vtanh.f32 %v3461_v9 }
 0x67b   :  { %v2798_v12 = vpop.eup %2797 }
 0x67c   :  { %v1512_v13 = vmul.f32 %v2798_v12, %v2796_v10 }
 0x67e   :  { %1583 = vmatmul.mubr.f32.vlgmr.msra.gmra.mrb[12].mxu0 %v1512_v13  ;;  %1654 = vmatmul.mubr.f32.vlgmr.msra.gmra.mrb[12].mxu1 %v1512_v13 }
 0x67f   :  { %2542 = vmatpush1.bf16.msra.mxu0 %v3073_v22  ;;  %2574 = vmatpush1.bf16.msra.mxu1 %v3076_v25 }
 0x680   :  { %2544 = vmatprep.subr.bf16.mxu0 %v3080_v29  ;;  %2576 = vmatprep.subr.bf16.mxu1 %v3084_v34 }
 0x681   :  { %1757 = vmatprep.mubr.f32.mxu0 %v2961_v0  ;;  %1828 = vmatprep.mubr.f32.mxu1 %v2961_v0 }
 0x683   :  { %2546 = vmatpush1.bf16.msra.mxu0 %v3086_v35  ;;  %2578 = vmatpush1.bf16.msra.mxu1 %v3090_v38 }
 0x684   :  { %2548 = vmatprep.subr.bf16.mxu0 %v3094_v42  ;;  %2580 = vmatprep.subr.bf16.mxu1 %v3098_v47 }
 0x687   :  { %2550 = vmatpush1.bf16.msra.mxu0 %v3102_v50  ;;  %2582 = vmatpush1.bf16.msra.mxu1 %v3106_v54 }
 0x688   :  { %2552 = vmatprep.subr.bf16.mxu0 %v3110_v58  ;;  %2584 = vmatprep.subr.bf16.mxu1 %v3114_v61 }
 0x68b   :  { %2554 = vmatpush1.bf16.msra.mxu0 %v3118_v2  ;;  %2586 = vmatpush1.bf16.msra.mxu1 %v3122_v5 }
 0x68c   :  { %2556 = vmatprep.subr.bf16.mxu0 %v3126_v8  ;;  %2588 = vmatprep.subr.bf16.mxu1 %v3130_v11 }
 0x68f   :  { %2558 = vmatpush1.bf16.msra.mxu0 %v3134_v15  ;;  %2590 = vmatpush1.bf16.msra.mxu1 %v3138_v19 }
 0x690   :  { %2560 = vmatprep.subr.bf16.mxu0 %v3142_v24  ;;  %2592 = vmatprep.subr.bf16.mxu1 %v3146_v28 }
 0x693   :  { %2562 = vmatpush1.bf16.msra.mxu0 %v3150_v33  ;;  %2594 = vmatpush1.bf16.msra.mxu1 %v3154_v39 }
 0x694   :  { %2564 = vmatprep.subr.bf16.mxu0 %v3158_v43  ;;  %2596 = vmatprep.subr.bf16.mxu1 %v3162_v46 }
 0x697   :  { %2566 = vmatpush1.bf16.msra.mxu0 %v3166_v52  ;;  %2598 = vmatpush1.bf16.msra.mxu1 %v3170_v56 }
 0x698   :  { %2568 = vmatprep.subr.bf16.mxu0 %v3174_v60  ;;  %2600 = vmatprep.subr.bf16.mxu1 %v3178_v1  ;;  %v1863_v60 = vld [vmem:[#allocation9] sm:$0xff]  ;;  %v1864_v1 = vld [vmem:[#allocation9 + $0x8] sm:$0xff] }
 0x69b   :  { %2570 = vmatpush1.bf16.msra.mxu0 %v3182_v4  ;;  %2602 = vmatpush1.bf16.msra.mxu1 %v3186_v6  ;;  %v2604_v4 = vpack.c.bf16 %v1864_v1, %v1863_v60  ;;  %v2962_v6 = vmov 0.0|0.0  }
 0x69c   :  { %2603 = vmatprep.subr.bf16.mxu0 %v2962_v6 }
 0x751   :  { %v1584_v22 = vpop.f32.mrb[12].mxu0  ;;  %v1655_v25 = vpop.f32.mrb[12].mxu1 }
 0x752   :  { %v2639_v29 = vadd.f32 %v1584_v22, %v3239_v14  ;;  %v1586_v34 = vpop.f32.mrb[13].mxu0  ;;  %v1657_v35 = vpop.f32.mrb[13].mxu1  ;;  %v2655_v58 = vadd.f32 %v1655_v25, %v3248_v44 }
 0x753   :  { %v2640_v38 = vadd.f32 %v1586_v34, %v3241_v16  ;;  %v2656_v50 = vadd.f32 %v1657_v35, %v3245_v37 }
 0x754   :  { %v2024_v42 = vmul.f32 -1.442695, %v2639_v29 }
 0x755   :  { %v2025_v47 = vmul.f32 -1.442695, %v2640_v38  ;;  %v2026_v54 = vmul.f32 -1.442695, %v2656_v50 }
 0x756   :  { %2799 = vpow2.f32 %v2024_v42 }
 0x757   :  { %2801 = vpow2.f32 %v2025_v47 }
 0x758   :  { %2803 = vpow2.f32 %v2026_v54 }
 0x759   :  { %2805 = vtanh.f32 %v2655_v58 }
 0x760   :  { %v2800_v61 = vpop.eup %2799 }
 0x761   :  { %v2802_v2 = vpop.eup %2801  ;;  %v1667_v5 = vadd.f32 1.0, %v2800_v61 }
 0x762   :  { %v1673_v8 = vadd.f32 1.0, %v2802_v2  ;;  %v2804_v11 = vpop.eup %2803 }
 0x763   :  { %2807 = vrcp.f32 %v1667_v5  ;;  %v2806_v15 = vpop.eup %2805  ;;  %v1680_v33 = vadd.f32 1.0, %v2804_v11  ;;  %v1958_v11 = vand.u32 127, %v97_v7 }
 0x764   :  { %2809 = vrcp.f32 %v1673_v8  ;;  %v2030_v8 = vld [vmem:[%s3531_s5] ss:$0 sm:$0xff]  ;;  %s2964_s5 = smov [#allocation11]  }
 0x765   :  { %2811 = vrcp.f32 %v1680_v33  ;;  %vm1959_vm2 = vcmp.lt.s32.totalorder %v1958_v11, 8  ;;  %s1979_s21 = sshll.u32 %s2964_s5, 4  ;;  %s1980_s21 = int_to_ptr.vmem [resolvable:$true] %s1979_s21 }
 0x766   :  { %s2923_s24 = scalar_lea.vmem %s1980_s21, 128  ;;  %p2928_p5 = scmp.lt.s32.totalorder %s1980_s21, %s1980_s21 }
 0x767   :  { %p2924_p4 = scmp.ne.s32.totalorder %s1980_s21, %s2923_s24  ;;  %p2929_p6 = scmp.lt.s32.totalorder %s2923_s24, %s2923_s24 }
 0x769   :  { %p2930_p7 = por %p2929_p6, %p2928_p5 }
 0x76b   :  { %p2931_p8 = pnand %p2930_p7, %p2924_p4 }
 0x76d   :  { %v2808_v19 = vpop.eup %2807 }
 0x76e   :  { %v2810_v24 = vpop.eup %2809  ;;  %v1684_v28 = vmul.f32 %v2808_v19, %v2806_v15 }
 0x76f   :  { %v1683_v39 = vmul.f32 %v2810_v24, %v3461_v9  ;;  %v2812_v46 = vpop.eup %2811 }
 0x771   :  { %v3501_v43 = vadd.f32 %v1684_v28, %v1683_v39 }
 0x773   :  { %2813 = vtanh.f32 %v3501_v43 }
 0x77d   :  { %v2814_v52 = vpop.eup %2813 }
 0x77e   :  { %v1687_v56 = vmul.f32 %v2814_v52, %v2812_v46 }
 0x780   :  { %1758 = vmatmul.mubr.f32.vlgmr.msra.gmra.mrb[14].mxu0 %v1687_v56  ;;  %1829 = vmatmul.mubr.f32.vlgmr.msra.gmra.mrb[14].mxu1 %v1687_v56 }
 0x781   :  { %2605 = vmatpush3.bf16.msra.mxu0 %v2604_v4  ;;  %2080 = vmatprep.mubr.msk.f32.mxu0 %vm2963_vm1, %v2961_v0 }
 0x782   :  { %2606 = vmatprep.subr.bf16.mxu0 %v2962_v6 }
 0x785   :  { %2608 = vmatpush3.bf16.msra.mxu0 %v2607_v20 }
 0x786   :  { %2609 = vmatprep.subr.bf16.mxu0 %v2962_v6 }
 0x789   :  { %2611 = vmatpush3.bf16.msra.mxu0 %v2610_v30 }
 0x78a   :  { %2612 = vmatprep.subr.bf16.mxu0 %v2962_v6 }
 0x78d   :  { %2614 = vmatpush3.bf16.msra.mxu0 %v2613_v36 }
 0x78e   :  { %2615 = vmatprep.subr.bf16.mxu0 %v2962_v6 }
 0x791   :  { %2617 = vmatpush3.bf16.msra.mxu0 %v2616_v45 }
 0x792   :  { %2618 = vmatprep.subr.bf16.mxu0 %v2962_v6 }
 0x795   :  { %2620 = vmatpush3.bf16.msra.mxu0 %v2619_v21 }
 0x796   :  { %2621 = vmatprep.subr.bf16.mxu0 %v2962_v6 }
 0x799   :  { %2623 = vmatpush3.bf16.msra.mxu0 %v2622_v53 }
 0x79a   :  { %2624 = vmatprep.subr.bf16.mxu0 %v2962_v6 }
 0x79d   :  { %2626 = vmatpush3.bf16.msra.mxu0 %v2625_v59 }
 0x853   :  { %v1759_v62 = vpop.f32.mrb[14].mxu0  ;;  %v1830_v63 = vpop.f32.mrb[14].mxu1 }
 0x854   :  { %v2641_v3 = vadd.f32 %v1759_v62, %v3239_v14  ;;  %v1761_v9 = vpop.f32.mrb[15].mxu0  ;;  %v1832_v10 = vpop.f32.mrb[15].mxu1  ;;  %v2657_v29 = vadd.f32 %v1830_v63, %v3248_v44 }
 0x855   :  { %v2642_v12 = vadd.f32 %v1761_v9, %v3241_v16  ;;  %v2658_v0 = vadd.f32 %v1832_v10, %v3245_v37 }
 0x856   :  { %v2027_v13 = vmul.f32 -1.442695, %v2641_v3 }
 0x857   :  { %v2028_v22 = vmul.f32 -1.442695, %v2642_v12  ;;  %v2029_v25 = vmul.f32 -1.442695, %v2658_v0 }
 0x858   :  { %2815 = vpow2.f32 %v2027_v13 }
 0x859   :  { %2817 = vpow2.f32 %v2028_v22 }
 0x85a   :  { %2819 = vpow2.f32 %v2029_v25 }
 0x85b   :  { %2821 = vtanh.f32 %v2657_v29 }
 0x862   :  { %v2816_v34 = vpop.eup %2815 }
 0x863   :  { %v2818_v35 = vpop.eup %2817  ;;  %v1842_v38 = vadd.f32 1.0, %v2816_v34 }
 0x864   :  { %v1848_v42 = vadd.f32 1.0, %v2818_v35  ;;  %v2820_v14 = vpop.eup %2819 }
 0x865   :  { %2823 = vrcp.f32 %v1842_v38  ;;  %v2822_v47 = vpop.eup %2821  ;;  %v1855_v58 = vadd.f32 1.0, %v2820_v14 }
 0x866   :  { %2825 = vrcp.f32 %v1848_v42 }
 0x867   :  { %2827 = vrcp.f32 %v1855_v58 }
 0x86f   :  { %v2824_v16 = vpop.eup %2823 }
 0x870   :  { %v2826_v50 = vpop.eup %2825  ;;  %v1859_v54 = vmul.f32 %v2824_v16, %v2822_v47 }
 0x871   :  { %v1858_v61 = vmul.f32 %v2826_v50, %v3501_v43  ;;  %v2828_v44 = vpop.eup %2827 }
 0x873   :  { %v1860_v37 = vadd.f32 %v1859_v54, %v1858_v61 }
 0x875   :  { %2829 = vtanh.f32 %v1860_v37 }
 0x87f   :  { %v2830_v2 = vpop.eup %2829 }
 0x880   :  { %v1862_v5 = vmul.f32 %v2830_v2, %v2828_v44 }
 0x882   :  { %2081 = vmatmul.mubr.f32.vlgmr.msra.gmra.mrb[16].mxu0 %v1862_v5 }
 0x955   :  { %v1952_v15 = vpop.f32.mrb[16].mxu0 }
 0x956   :  { %v1953_v19 = vadd.f32 %v2030_v8, %v1952_v15  ;;  %v2082_v24 = vpop.f32.mrb[17].mxu0 }
 0x958   :  { %v1956_v28 = vmax.f32 %v1953_v19, 0.0 }
 0x95a   :  { %v1960_v33 = vsel %vm1959_vm2, %v1956_v28, -1e+30 }
 0x95b   :  { %1961 = vmax.xlane.f32.xlu0 %v1960_v33 }
 0x9e8   :  { %v1962_v39 = vpop.xlane.xlu0 %1961 }
 0x9e9   :  { %v1963_v43 = vsub.f32 %v1960_v33, %v1962_v39 }
 0x9eb   :  { %v1964_v46 = vmul.f32 1.442695, %v1963_v43 }
 0x9ed   :  { %2831 = vpow2.f32 %v1964_v46 }
 0x9f7   :  { %v2832_v52 = vpop.eup %2831 }
 0x9f8   :  { %1966 = vadd.xlane.f32.xlu0 %v2832_v52 }
 0xa85   :  { %v1967_v56 = vpop.xlane.xlu0 %1966 }
 0xa86   :  { %2833 = vlog2.f32 %v1967_v56 }
 0xa90   :  { %v2834_v60 = vpop.eup %2833 }
 0xa91   :  { %v1969_v1 = vmul.f32 0.6931472, %v2834_v60 }
 0xa93   :  { %v1970_v7 = vadd.f32 %v1969_v1, %v1962_v39 }
 0xa95   :  { %v1971_v4 = vsub.f32 %v1960_v33, %v1970_v7 }
 0xa97   :  { %1972 = vst [vmem:[#allocation11] sm:$0xff] %v1971_v4 }
 0xa98   :  { %2934 = shalt.err (!%p2931_p8)
}
 0xa99   :  { %s2935_s27 = scalar_lea.hbm %s3532_s6, 128 }
 0xa9a   :  { %p2936_p9 = scmp.ne.s32.totalorder %s3532_s6, %s2935_s27  ;;  %p2939_p10 = scmp.lt.u32.totalorder %s2935_s27, %s3532_s6 }
 0xa9c   :  { %p2941_p11 = pnand %p2939_p10, %p2936_p9 }
 0xa9e   :  { %2944 = shalt.err (!%p2941_p11)
}
 0xa9f   :  { %1982 = dma.vmem_to_hbm [thread:$0]  %s1980_s21, 128, %s3532_s6, [#allocation5]  }
 0xaa0   :  { %2951 = dma.done.wait [#allocation5], 128  }
 0xaa1   :  { %2952 = vsyncadd [#allocation5], 4294967168 }
 0xaa2   :  { %1986 = vsyncpa [#allocation4], 1 }
 0xaa3   :  { %1987 = vsyncpa [#allocation7], 1 }
 0xaa4   :  { %1988 = vsyncpa [#allocation10], 1 }
 0xaa5   :  { %1989 = vsyncpa [#allocation5], 1 }

</bundles_post_ra>
